<compile_context>
chip_gen: v5e
topology: v5e:2x2
jax: 0.10.0
libtpu: 0.0.40
codegen_flags: <defaults>
</compile_context>

<pallas_src>
import functools

import jax
import jax.numpy as jnp
from jax.experimental import pallas as pl
from jax.experimental.pallas import tpu as pltpu


# ----------------------------------------------------------------------------
# Generation-aware VMEM budgeting.
# ----------------------------------------------------------------------------
@functools.lru_cache(maxsize=None)
def _vmem_capacity_bytes():
    try:
        return int(pltpu.get_tpu_info().vmem_capacity_bytes)
    except Exception:
        return 64 * 1024 * 1024  # conservative fallback (true for v7x)


def _vmem_limit_bytes():
    # Leave ~15% headroom for compiler-internal scratch / semaphores.
    return min(int(_vmem_capacity_bytes() * 0.85), 112 * 1024 * 1024)


def _proj_tiles():
    # (seq, out-channel) tile table for the 1x1 projections, per generation.
    if _vmem_capacity_bytes() >= 96 * 1024 * 1024:   # v5e / v6e (128 MiB VMEM)
        return 1024, 4096
    return 512, 2048                                  # v7x (64 MiB VMEM)


def _gelu_f32(v):
    # Exact (erf-based) GELU -- matches torch.nn.GELU() default.
    return 0.5 * v * (1.0 + jax.lax.erf(v * 0.7071067811865476))


# ----------------------------------------------------------------------------
# 1x1 projection kernels (vocab projection, fused bias, optional fused
# attention-mask fill).
# ----------------------------------------------------------------------------
def _proj_kernel(x_ref, w_ref, b_ref, o_ref):
    # x_ref: (1, TS, Cin), w_ref: (Cin, TN), b_ref: (1, TN), o_ref: (1, TS, TN)
    y = jnp.dot(x_ref[0], w_ref[...], preferred_element_type=jnp.float32)
    o_ref[0] = (y + b_ref[...]).astype(o_ref.dtype)


def _proj_mask_kernel(x_ref, w_ref, b_ref, m_ref, o_ref):
    # Same as above + masked_fill(mask == 0, -1e9) fused before the store.
    y = jnp.dot(x_ref[0], w_ref[...], preferred_element_type=jnp.float32) + b_ref[...]
    y = jnp.where(m_ref[0] != 0, y, -1e9)
    o_ref[0] = y.astype(o_ref.dtype)


def pointwise_conv(x, w, b, *, out_dtype=None, mask=None, tile_s=None, tile_n=None):
    """x: [B,S,Cin] @ w: [Cin,Cout] + b: [1,Cout]  (optional mask: [B,S,1]).

    Grid is (Cout-tiles, B, S-tiles): the out-channel axis is OUTERMOST and the
    weight/bias index_map depends only on it, so each weight tile is fetched
    from HBM once and stays resident across all (batch, seq) tiles.
    """
    B, S, Cin = x.shape
    Cout = w.shape[1]
    out_dtype = x.dtype if out_dtype is None else out_dtype
    dts, dtn = _proj_tiles()
    ts = min(tile_s if tile_s is not None else dts, S)
    tn = min(tile_n if tile_n is not None else dtn, Cout)
    grid = (pl.cdiv(Cout, tn), B, pl.cdiv(S, ts))

    in_specs = [
        pl.BlockSpec((1, ts, Cin), lambda ni, bi, si: (bi, si, 0)),
        pl.BlockSpec((Cin, tn), lambda ni, bi, si: (0, ni)),   # resident per ni
        pl.BlockSpec((1, tn), lambda ni, bi, si: (0, ni)),
    ]
    args = [x, w, b]
    kernel = _proj_kernel
    if mask is not None:
        in_specs.append(pl.BlockSpec((1, ts, 1), lambda ni, bi, si: (bi, si, 0)))
        args.append(mask)
        kernel = _proj_mask_kernel

    return pl.pallas_call(
        kernel,
        out_shape=jax.ShapeDtypeStruct((B, S, Cout), out_dtype),
        grid_spec=pltpu.PrefetchScalarGridSpec(
            num_scalar_prefetch=0,
            grid=grid,
            in_specs=in_specs,
            out_specs=pl.BlockSpec((1, ts, tn), lambda ni, bi, si: (bi, si, ni)),
        ),
        compiler_params=pltpu.CompilerParams(
            dimension_semantics=("parallel", "parallel", "parallel"),
            vmem_limit_bytes=_vmem_limit_bytes(),
        ),
    )(*args)


# ----------------------------------------------------------------------------
# Fused TCN residual block kernel (one batch element per grid step).
# ----------------------------------------------------------------------------
def _tcn_layer_kernel(x_ref, w1_ref, b1_ref, g1_ref, be1_ref,
                      w2_ref, b2_ref, g2_ref, be2_ref, o_ref, *, dilation):
    """conv1 -> LN1 -> GELU -> conv2 -> LN2 -> +residual -> GELU.

    x_ref:       (1, S, H)  activation dtype (bf16 or f32)
    w*_ref:      (3, H, H)  conv taps stored as (K, Cin, Cout)
    b/g/be refs: (1, H)     f32 conv bias / LN gamma / LN beta
    Dilated taps are built from the resident x block with value-level shifted
    slices (zero rows implement the conv's 'same' padding) -- no scratch buffer.
    """
    d = dilation
    _, S, H = x_ref.shape
    act_dtype = x_ref.dtype

    def shifted_taps(center):
        if d >= S:  # receptive field exceeds the sequence: both taps all-zero
            z = jnp.zeros_like(center)
            return z, z
        zeros = jnp.zeros((d, H), center.dtype)
        xm = jnp.concatenate([zeros, center[:S - d, :]], axis=0)   # x[t - d]
        xp = jnp.concatenate([center[d:, :], zeros], axis=0)       # x[t + d]
        return xm, xp

    def conv_ln(center, w_ref, b_ref, g_ref, be_ref):
        xm, xp = shifted_taps(center)
        y = (jnp.dot(xm, w_ref[0], preferred_element_type=jnp.float32)
             + jnp.dot(center, w_ref[1], preferred_element_type=jnp.float32)
             + jnp.dot(xp, w_ref[2], preferred_element_type=jnp.float32))
        y = y + b_ref[...]
        # LayerNorm over channels, two-pass variance (matches nn.LayerNorm).
        mu = jnp.mean(y, axis=-1, keepdims=True)
        yc = y - mu
        var = jnp.mean(yc * yc, axis=-1, keepdims=True)
        y = yc * jax.lax.rsqrt(var + 1e-5)
        return y * g_ref[...] + be_ref[...]

    x = x_ref[0]
    h = _gelu_f32(conv_ln(x, w1_ref, b1_ref, g1_ref, be1_ref)).astype(act_dtype)
    y2 = conv_ln(h, w2_ref, b2_ref, g2_ref, be2_ref)
    o_ref[0] = _gelu_f32(y2 + x.astype(jnp.float32)).astype(o_ref.dtype)


def tcn_residual_block(x, lp):
    """Fused TCN residual block. x: [B, S, H] -> [B, S, H]."""
    B, S, H = x.shape
    d = int(lp["dilation"])
    act_spec = pl.BlockSpec((1, S, H), lambda b: (b, 0, 0))
    w_spec = pl.BlockSpec((3, H, H), lambda b: (0, 0, 0))     # grid-constant: resident
    v_spec = pl.BlockSpec((1, H), lambda b: (0, 0))
    return pl.pallas_call(
        functools.partial(_tcn_layer_kernel, dilation=d),
        out_shape=jax.ShapeDtypeStruct((B, S, H), x.dtype),
        grid_spec=pltpu.PrefetchScalarGridSpec(
            num_scalar_prefetch=0,
            grid=(B,),
            in_specs=[act_spec, w_spec, v_spec, v_spec, v_spec,
                      w_spec, v_spec, v_spec, v_spec],
            out_specs=act_spec,
        ),
        input_output_aliases={0: 0},   # write the new x over the old x buffer
        compiler_params=pltpu.CompilerParams(
            dimension_semantics=("parallel",),
            vmem_limit_bytes=_vmem_limit_bytes(),
        ),
    )(x, lp["w1"], lp["b1"], lp["g1"], lp["be1"],
      lp["w2"], lp["b2"], lp["g2"], lp["be2"])


# ----------------------------------------------------------------------------
# Parameters + forward
# ----------------------------------------------------------------------------
def init_atcn_params(key, vocab_size, embedding_dim, hidden_dim, num_layers,
                     kernel_size=3, max_dilation=256):
    assert kernel_size == 3, "Pallas ATCN kernel is specialized for kernel_size=3"

    def kaiming(k, shape, fan_out):
        std = (2.0 / fan_out) ** 0.5
        return std * jax.random.normal(k, shape, jnp.float32)

    keys = jax.random.split(key, 3 + num_layers)
    params = {}
    # nn.Embedding re-initialized with normal(0, 0.1) by _init_weights.
    params["embedding"] = 0.1 * jax.random.normal(
        keys[0], (vocab_size, embedding_dim), jnp.float32)
    # Conv1d(E, H, 1) stored as (E, H).
    params["in_proj_w"] = kaiming(keys[1], (embedding_dim, hidden_dim), hidden_dim)
    params["in_proj_b"] = jnp.zeros((1, hidden_dim), jnp.float32)

    dilations = [min(2 ** i, max_dilation) for i in range(num_layers)]
    layers = []
    for i, d in enumerate(dilations):
        k1, k2 = jax.random.split(keys[2 + i], 2)
        fan_out = hidden_dim * kernel_size
        layers.append({
            "dilation": d,
            # conv weights stored as (K, Cin, Cout) for the [B,S,C] layout
            "w1": kaiming(k1, (kernel_size, hidden_dim, hidden_dim), fan_out),
            "b1": jnp.zeros((1, hidden_dim), jnp.float32),
            "g1": jnp.ones((1, hidden_dim), jnp.float32),
            "be1": jnp.zeros((1, hidden_dim), jnp.float32),
            "w2": kaiming(k2, (kernel_size, hidden_dim, hidden_dim), fan_out),
            "b2": jnp.zeros((1, hidden_dim), jnp.float32),
            "g2": jnp.ones((1, hidden_dim), jnp.float32),
            "be2": jnp.zeros((1, hidden_dim), jnp.float32),
        })
    params["layers"] = layers
    # Conv1d(H, V, 1) stored as (H, V).
    params["out_proj_w"] = kaiming(keys[-1], (hidden_dim, vocab_size), vocab_size)
    params["out_proj_b"] = jnp.zeros((1, vocab_size), jnp.float32)
    return params


def cast_params(params, dtype):
    """Cast embedding + matmul weights to `dtype`; keep bias/LN params f32."""
    p = dict(params)
    p["embedding"] = params["embedding"].astype(dtype)
    p["in_proj_w"] = params["in_proj_w"].astype(dtype)
    p["out_proj_w"] = params["out_proj_w"].astype(dtype)
    p["layers"] = [dict(lp, w1=lp["w1"].astype(dtype), w2=lp["w2"].astype(dtype))
                   for lp in params["layers"]]
    return p


def atcn_forward(params, input_ids, attention_mask=None, *, logits_dtype=jnp.float32):
    """input_ids: [B, S] int32 -> logits [B, S, V]."""
    act_dtype = params["in_proj_w"].dtype
    # Embedding gather + 1x1 input projection fold into a pre-projected [V, H]
    # table (gathering rows commutes with the per-row matmul): no [B, S, E]
    # intermediate and no per-token projection matmul.
    in_table = (jnp.dot(params["embedding"], params["in_proj_w"],
                        preferred_element_type=jnp.float32)
                + params["in_proj_b"]).astype(act_dtype)              # [V, H]
    x = jnp.take(in_table, input_ids, axis=0)                         # [B,S,H] (XLA gather glue)
    for lp in params["layers"]:
        x = tcn_residual_block(x, lp)
    mask3 = None
    if attention_mask is not None:
        mask3 = attention_mask[..., None].astype(jnp.int32)           # [B,S,1]
    return pointwise_conv(x, params["out_proj_w"], params["out_proj_b"],
                          out_dtype=logits_dtype, mask=mask3)         # [B,S,V]


# ----------------------------------------------------------------------------
# Pure-JAX reference (mirrors the same numerics) for correctness checks.
# ----------------------------------------------------------------------------
def _shift_ref(x, d):
    B, S, C = x.shape
    if d >= S:
        z = jnp.zeros_like(x)
        return z, z
    z = jnp.zeros((B, d, C), x.dtype)
    return (jnp.concatenate([z, x[:, :S - d]], axis=1),   # x[t - d]
            jnp.concatenate([x[:, d:], z], axis=1))       # x[t + d]


def _conv_ln_ref(x, w, b, g, be, d):
    xm, xp = _shift_ref(x, d)
    y = (jnp.dot(xm, w[0], preferred_element_type=jnp.float32)
         + jnp.dot(x, w[1], preferred_element_type=jnp.float32)
         + jnp.dot(xp, w[2], preferred_element_type=jnp.float32)) + b
    mu = jnp.mean(y, axis=-1, keepdims=True)
    var = jnp.mean(jnp.square(y - mu), axis=-1, keepdims=True)
    y = (y - mu) * jax.lax.rsqrt(var + 1e-5)
    return y * g + be


def atcn_forward_ref(params, input_ids, attention_mask=None):
    act_dtype = params["in_proj_w"].dtype
    emb = jnp.take(params["embedding"], input_ids, axis=0)
    x = (jnp.dot(emb, params["in_proj_w"], preferred_element_type=jnp.float32)
         + params["in_proj_b"]).astype(act_dtype)
    for lp in params["layers"]:
        d = int(lp["dilation"])
        h = _gelu_f32(_conv_ln_ref(x, lp["w1"], lp["b1"], lp["g1"], lp["be1"], d))
        h = h.astype(act_dtype)
        y = _conv_ln_ref(h, lp["w2"], lp["b2"], lp["g2"], lp["be2"], d)
        x = _gelu_f32(y + x.astype(jnp.float32)).astype(act_dtype)
    logits = (jnp.dot(x, params["out_proj_w"], preferred_element_type=jnp.float32)
              + params["out_proj_b"])
    if attention_mask is not None:
        logits = jnp.where(attention_mask[..., None] != 0, logits, -1e9)
    return logits


# ----------------------------------------------------------------------------
if __name__ == "__main__":
    B, S = 2, 32
    VOCAB, EMB, HID, LAYERS = 64, 32, 32, 4

    key = jax.random.PRNGKey(0)
    k_param, k_ids = jax.random.split(key)
    params = init_atcn_params(k_param, VOCAB, EMB, HID, LAYERS)

    input_ids = jax.random.randint(k_ids, (B, S), 0, VOCAB, dtype=jnp.int32)
    attention_mask = jnp.ones((B, S), jnp.int32).at[:, -3:].set(0)

    # f32 path: structural check against the pure-JAX reference.
    logits_f32 = jax.block_until_ready(
        atcn_forward(params, input_ids, attention_mask))
    err_f32 = float(jnp.max(jnp.abs(
        logits_f32 - atcn_forward_ref(params, input_ids, attention_mask))))

    # bf16 deployment path (bf16 activations/weights, f32 MXU accumulation).
    params_bf16 = cast_params(params, jnp.bfloat16)
    logits_bf16 = jax.block_until_ready(
        atcn_forward(params_bf16, input_ids, attention_mask))
    err_bf16 = float(jnp.max(jnp.abs(
        logits_bf16 - atcn_forward_ref(params_bf16, input_ids, attention_mask))))

    assert logits_f32.shape == (B, S, VOCAB), logits_f32.shape
    assert logits_bf16.shape == (B, S, VOCAB), logits_bf16.shape
    assert logits_bf16.dtype == jnp.float32
    assert bool(jnp.all(jnp.isfinite(logits_f32)))
    assert bool(jnp.all(jnp.isfinite(logits_bf16)))
    assert err_f32 < 5e-2, f"f32 mismatch vs reference: {err_f32}"
    assert err_bf16 < 2.5e-1, f"bf16 mismatch vs reference: {err_bf16}"
    print("KERNEL_OK")
</pallas_src>

<mosaic_0001>
module attributes {stable_mosaic.version = 11 : i64} {
  func.func @_tcn_layer_kernel(%arg0: i32, %arg1: memref<1x32x32xf32, #tpu.memory_space<vmem>>, %arg2: memref<3x32x32xf32, #tpu.memory_space<vmem>>, %arg3: memref<1x32xf32, #tpu.memory_space<vmem>>, %arg4: memref<1x32xf32, #tpu.memory_space<vmem>>, %arg5: memref<1x32xf32, #tpu.memory_space<vmem>>, %arg6: memref<3x32x32xf32, #tpu.memory_space<vmem>>, %arg7: memref<1x32xf32, #tpu.memory_space<vmem>>, %arg8: memref<1x32xf32, #tpu.memory_space<vmem>>, %arg9: memref<1x32xf32, #tpu.memory_space<vmem>>, %arg10: memref<1x32x32xf32, #tpu.memory_space<vmem>>) attributes {dimension_semantics = [#tpu.dimension_semantics<parallel>], iteration_bounds = array<i64: 2>, scalar_prefetch = 0 : i64, scratch_operands = 0 : i64, tpu.core_type = #tpu.core_type<tc>, window_params = [{transform_indices = @transform_0, window_bounds = array<i64: 1, 32, 32>}, {pipeline_mode = #tpu.pipeline_mode<synchronous>, transform_indices = @transform_1, window_bounds = array<i64: 3, 32, 32>}, {pipeline_mode = #tpu.pipeline_mode<synchronous>, transform_indices = @transform_2, window_bounds = array<i64: 1, 32>}, {pipeline_mode = #tpu.pipeline_mode<synchronous>, transform_indices = @transform_3, window_bounds = array<i64: 1, 32>}, {pipeline_mode = #tpu.pipeline_mode<synchronous>, transform_indices = @transform_4, window_bounds = array<i64: 1, 32>}, {pipeline_mode = #tpu.pipeline_mode<synchronous>, transform_indices = @transform_5, window_bounds = array<i64: 3, 32, 32>}, {pipeline_mode = #tpu.pipeline_mode<synchronous>, transform_indices = @transform_6, window_bounds = array<i64: 1, 32>}, {pipeline_mode = #tpu.pipeline_mode<synchronous>, transform_indices = @transform_7, window_bounds = array<i64: 1, 32>}, {pipeline_mode = #tpu.pipeline_mode<synchronous>, transform_indices = @transform_8, window_bounds = array<i64: 1, 32>}, {transform_indices = @transform_9, window_bounds = array<i64: 1, 32, 32>}]} {
    %c0 = arith.constant 0 : index
    %c0_0 = arith.constant 0 : index
    %c0_1 = arith.constant 0 : index
    %0 = vector.load %arg1[%c0, %c0_0, %c0_1] : memref<1x32x32xf32, #tpu.memory_space<vmem>>, vector<1x32x32xf32>
    %1 = vector.shape_cast %0 : vector<1x32x32xf32> to vector<32x32xf32>
    %cst = arith.constant 0.000000e+00 : f32
    %2 = vector.broadcast %cst : f32 to vector<1x32xf32>
    %3 = vector.extract_strided_slice %1 {offsets = [0, 0], sizes = [31, 32], strides = [1, 1]} : vector<32x32xf32> to vector<31x32xf32>
    %4 = tpu.concatenate %2, %3 in 0 : vector<1x32xf32>, vector<31x32xf32> -> vector<32x32xf32>
    %5 = vector.extract_strided_slice %1 {offsets = [1, 0], sizes = [31, 32], strides = [1, 1]} : vector<32x32xf32> to vector<31x32xf32>
    %6 = tpu.concatenate %5, %2 in 0 : vector<31x32xf32>, vector<1x32xf32> -> vector<32x32xf32>
    %c0_2 = arith.constant 0 : index
    %c0_3 = arith.constant 0 : index
    %c0_4 = arith.constant 0 : index
    %7 = vector.load %arg2[%c0_2, %c0_3, %c0_4] : memref<3x32x32xf32, #tpu.memory_space<vmem>>, vector<1x32x32xf32>
    %8 = vector.shape_cast %7 : vector<1x32x32xf32> to vector<32x32xf32>
    %cst_5 = arith.constant dense<0.000000e+00> : vector<32x32xf32>
    %9 = tpu.matmul %4, %8, %cst_5 {dimension_numbers = #tpu.dot_dimension_numbers<[1], [0], [0], [1], [0, 0, 1, 1], [], []>} : vector<32x32xf32>, vector<32x32xf32>, vector<32x32xf32> -> vector<32x32xf32>
    %c1 = arith.constant 1 : index
    %c0_6 = arith.constant 0 : index
    %c0_7 = arith.constant 0 : index
    %10 = vector.load %arg2[%c1, %c0_6, %c0_7] : memref<3x32x32xf32, #tpu.memory_space<vmem>>, vector<1x32x32xf32>
    %11 = vector.shape_cast %10 : vector<1x32x32xf32> to vector<32x32xf32>
    %cst_8 = arith.constant dense<0.000000e+00> : vector<32x32xf32>
    %12 = tpu.matmul %1, %11, %cst_8 {dimension_numbers = #tpu.dot_dimension_numbers<[1], [0], [0], [1], [0, 0, 1, 1], [], []>} : vector<32x32xf32>, vector<32x32xf32>, vector<32x32xf32> -> vector<32x32xf32>
    %13 = arith.addf %9, %12 : vector<32x32xf32>
    %c2 = arith.constant 2 : index
    %c0_9 = arith.constant 0 : index
    %c0_10 = arith.constant 0 : index
    %14 = vector.load %arg2[%c2, %c0_9, %c0_10] : memref<3x32x32xf32, #tpu.memory_space<vmem>>, vector<1x32x32xf32>
    %15 = vector.shape_cast %14 : vector<1x32x32xf32> to vector<32x32xf32>
    %cst_11 = arith.constant dense<0.000000e+00> : vector<32x32xf32>
    %16 = tpu.matmul %6, %15, %cst_11 {dimension_numbers = #tpu.dot_dimension_numbers<[1], [0], [0], [1], [0, 0, 1, 1], [], []>} : vector<32x32xf32>, vector<32x32xf32>, vector<32x32xf32> -> vector<32x32xf32>
    %17 = arith.addf %13, %16 : vector<32x32xf32>
    %c0_12 = arith.constant 0 : index
    %c0_13 = arith.constant 0 : index
    %18 = vector.load %arg3[%c0_12, %c0_13] : memref<1x32xf32, #tpu.memory_space<vmem>>, vector<1x32xf32>
    %19 = vector.broadcast %18 : vector<1x32xf32> to vector<32x32xf32>
    %20 = arith.addf %17, %19 : vector<32x32xf32>
    %cst_14 = arith.constant dense<0.000000e+00> : vector<32xf32>
    %21 = vector.multi_reduction <add>, %20, %cst_14 [1] : vector<32x32xf32> to vector<32xf32>
    %22 = vector.shape_cast %21 : vector<32xf32> to vector<32x1xf32>
    %cst_15 = arith.constant 3.200000e+01 : f32
    %23 = vector.broadcast %cst_15 : f32 to vector<32x1xf32>
    %24 = arith.divf %22, %23 : vector<32x1xf32>
    %25 = vector.broadcast %24 : vector<32x1xf32> to vector<32x32xf32>
    %26 = arith.subf %20, %25 : vector<32x32xf32>
    %27 = arith.mulf %26, %26 : vector<32x32xf32>
    %cst_16 = arith.constant dense<0.000000e+00> : vector<32xf32>
    %28 = vector.multi_reduction <add>, %27, %cst_16 [1] : vector<32x32xf32> to vector<32xf32>
    %29 = vector.shape_cast %28 : vector<32xf32> to vector<32x1xf32>
    %cst_17 = arith.constant 3.200000e+01 : f32
    %30 = vector.broadcast %cst_17 : f32 to vector<32x1xf32>
    %31 = arith.divf %29, %30 : vector<32x1xf32>
    %cst_18 = arith.constant 9.99999974E-6 : f32
    %32 = vector.broadcast %cst_18 : f32 to vector<32x1xf32>
    %33 = arith.addf %31, %32 : vector<32x1xf32>
    %34 = math.rsqrt %33 : vector<32x1xf32>
    %35 = vector.broadcast %34 : vector<32x1xf32> to vector<32x32xf32>
    %36 = arith.mulf %26, %35 : vector<32x32xf32>
    %c0_19 = arith.constant 0 : index
    %c0_20 = arith.constant 0 : index
    %37 = vector.load %arg4[%c0_19, %c0_20] : memref<1x32xf32, #tpu.memory_space<vmem>>, vector<1x32xf32>
    %38 = vector.broadcast %37 : vector<1x32xf32> to vector<32x32xf32>
    %39 = arith.mulf %36, %38 : vector<32x32xf32>
    %c0_21 = arith.constant 0 : index
    %c0_22 = arith.constant 0 : index
    %40 = vector.load %arg5[%c0_21, %c0_22] : memref<1x32xf32, #tpu.memory_space<vmem>>, vector<1x32xf32>
    %41 = vector.broadcast %40 : vector<1x32xf32> to vector<32x32xf32>
    %42 = arith.addf %39, %41 : vector<32x32xf32>
    %cst_23 = arith.constant 5.000000e-01 : f32
    %43 = vector.broadcast %cst_23 : f32 to vector<32x32xf32>
    %44 = arith.mulf %43, %42 : vector<32x32xf32>
    %cst_24 = arith.constant 0.707106769 : f32
    %45 = vector.broadcast %cst_24 : f32 to vector<32x32xf32>
    %46 = arith.mulf %42, %45 : vector<32x32xf32>
    %47 = math.erf %46 : vector<32x32xf32>
    %cst_25 = arith.constant 1.000000e+00 : f32
    %48 = vector.broadcast %cst_25 : f32 to vector<32x32xf32>
    %49 = arith.addf %48, %47 : vector<32x32xf32>
    %50 = arith.mulf %44, %49 : vector<32x32xf32>
    %cst_26 = arith.constant 0.000000e+00 : f32
    %51 = vector.broadcast %cst_26 : f32 to vector<1x32xf32>
    %52 = vector.extract_strided_slice %50 {offsets = [0, 0], sizes = [31, 32], strides = [1, 1]} : vector<32x32xf32> to vector<31x32xf32>
    %53 = tpu.concatenate %51, %52 in 0 : vector<1x32xf32>, vector<31x32xf32> -> vector<32x32xf32>
    %54 = vector.extract_strided_slice %50 {offsets = [1, 0], sizes = [31, 32], strides = [1, 1]} : vector<32x32xf32> to vector<31x32xf32>
    %55 = tpu.concatenate %54, %51 in 0 : vector<31x32xf32>, vector<1x32xf32> -> vector<32x32xf32>
    %c0_27 = arith.constant 0 : index
    %c0_28 = arith.constant 0 : index
    %c0_29 = arith.constant 0 : index
    %56 = vector.load %arg6[%c0_27, %c0_28, %c0_29] : memref<3x32x32xf32, #tpu.memory_space<vmem>>, vector<1x32x32xf32>
    %57 = vector.shape_cast %56 : vector<1x32x32xf32> to vector<32x32xf32>
    %cst_30 = arith.constant dense<0.000000e+00> : vector<32x32xf32>
    %58 = tpu.matmul %53, %57, %cst_30 {dimension_numbers = #tpu.dot_dimension_numbers<[1], [0], [0], [1], [0, 0, 1, 1], [], []>} : vector<32x32xf32>, vector<32x32xf32>, vector<32x32xf32> -> vector<32x32xf32>
    %c1_31 = arith.constant 1 : index
    %c0_32 = arith.constant 0 : index
    %c0_33 = arith.constant 0 : index
    %59 = vector.load %arg6[%c1_31, %c0_32, %c0_33] : memref<3x32x32xf32, #tpu.memory_space<vmem>>, vector<1x32x32xf32>
    %60 = vector.shape_cast %59 : vector<1x32x32xf32> to vector<32x32xf32>
    %cst_34 = arith.constant dense<0.000000e+00> : vector<32x32xf32>
    %61 = tpu.matmul %50, %60, %cst_34 {dimension_numbers = #tpu.dot_dimension_numbers<[1], [0], [0], [1], [0, 0, 1, 1], [], []>} : vector<32x32xf32>, vector<32x32xf32>, vector<32x32xf32> -> vector<32x32xf32>
    %62 = arith.addf %58, %61 : vector<32x32xf32>
    %c2_35 = arith.constant 2 : index
    %c0_36 = arith.constant 0 : index
    %c0_37 = arith.constant 0 : index
    %63 = vector.load %arg6[%c2_35, %c0_36, %c0_37] : memref<3x32x32xf32, #tpu.memory_space<vmem>>, vector<1x32x32xf32>
    %64 = vector.shape_cast %63 : vector<1x32x32xf32> to vector<32x32xf32>
    %cst_38 = arith.constant dense<0.000000e+00> : vector<32x32xf32>
    %65 = tpu.matmul %55, %64, %cst_38 {dimension_numbers = #tpu.dot_dimension_numbers<[1], [0], [0], [1], [0, 0, 1, 1], [], []>} : vector<32x32xf32>, vector<32x32xf32>, vector<32x32xf32> -> vector<32x32xf32>
    %66 = arith.addf %62, %65 : vector<32x32xf32>
    %c0_39 = arith.constant 0 : index
    %c0_40 = arith.constant 0 : index
    %67 = vector.load %arg7[%c0_39, %c0_40] : memref<1x32xf32, #tpu.memory_space<vmem>>, vector<1x32xf32>
    %68 = vector.broadcast %67 : vector<1x32xf32> to vector<32x32xf32>
    %69 = arith.addf %66, %68 : vector<32x32xf32>
    %cst_41 = arith.constant dense<0.000000e+00> : vector<32xf32>
    %70 = vector.multi_reduction <add>, %69, %cst_41 [1] : vector<32x32xf32> to vector<32xf32>
    %71 = vector.shape_cast %70 : vector<32xf32> to vector<32x1xf32>
    %cst_42 = arith.constant 3.200000e+01 : f32
    %72 = vector.broadcast %cst_42 : f32 to vector<32x1xf32>
    %73 = arith.divf %71, %72 : vector<32x1xf32>
    %74 = vector.broadcast %73 : vector<32x1xf32> to vector<32x32xf32>
    %75 = arith.subf %69, %74 : vector<32x32xf32>
    %76 = arith.mulf %75, %75 : vector<32x32xf32>
    %cst_43 = arith.constant dense<0.000000e+00> : vector<32xf32>
    %77 = vector.multi_reduction <add>, %76, %cst_43 [1] : vector<32x32xf32> to vector<32xf32>
    %78 = vector.shape_cast %77 : vector<32xf32> to vector<32x1xf32>
    %cst_44 = arith.constant 3.200000e+01 : f32
    %79 = vector.broadcast %cst_44 : f32 to vector<32x1xf32>
    %80 = arith.divf %78, %79 : vector<32x1xf32>
    %cst_45 = arith.constant 9.99999974E-6 : f32
    %81 = vector.broadcast %cst_45 : f32 to vector<32x1xf32>
    %82 = arith.addf %80, %81 : vector<32x1xf32>
    %83 = math.rsqrt %82 : vector<32x1xf32>
    %84 = vector.broadcast %83 : vector<32x1xf32> to vector<32x32xf32>
    %85 = arith.mulf %75, %84 : vector<32x32xf32>
    %c0_46 = arith.constant 0 : index
    %c0_47 = arith.constant 0 : index
    %86 = vector.load %arg8[%c0_46, %c0_47] : memref<1x32xf32, #tpu.memory_space<vmem>>, vector<1x32xf32>
    %87 = vector.broadcast %86 : vector<1x32xf32> to vector<32x32xf32>
    %88 = arith.mulf %85, %87 : vector<32x32xf32>
    %c0_48 = arith.constant 0 : index
    %c0_49 = arith.constant 0 : index
    %89 = vector.load %arg9[%c0_48, %c0_49] : memref<1x32xf32, #tpu.memory_space<vmem>>, vector<1x32xf32>
    %90 = vector.broadcast %89 : vector<1x32xf32> to vector<32x32xf32>
    %91 = arith.addf %88, %90 : vector<32x32xf32>
    %92 = arith.addf %91, %1 : vector<32x32xf32>
    %cst_50 = arith.constant 5.000000e-01 : f32
    %93 = vector.broadcast %cst_50 : f32 to vector<32x32xf32>
    %94 = arith.mulf %93, %92 : vector<32x32xf32>
    %cst_51 = arith.constant 0.707106769 : f32
    %95 = vector.broadcast %cst_51 : f32 to vector<32x32xf32>
    %96 = arith.mulf %92, %95 : vector<32x32xf32>
    %97 = math.erf %96 : vector<32x32xf32>
    %cst_52 = arith.constant 1.000000e+00 : f32
    %98 = vector.broadcast %cst_52 : f32 to vector<32x32xf32>
    %99 = arith.addf %98, %97 : vector<32x32xf32>
    %100 = arith.mulf %94, %99 : vector<32x32xf32>
    %c0_53 = arith.constant 0 : index
    %c0_54 = arith.constant 0 : index
    %c0_55 = arith.constant 0 : index
    %101 = vector.load %arg10[%c0_53, %c0_54, %c0_55] : memref<1x32x32xf32, #tpu.memory_space<vmem>>, vector<1x32x32xf32>
    %102 = vector.shape_cast %101 : vector<1x32x32xf32> to vector<32x32xf32>
    %103 = vector.shape_cast %100 : vector<32x32xf32> to vector<1x32x32xf32>
    tpu.vector_store %arg10[%c0_53, %c0_54, %c0_55], %103 {strides = array<i32>} : memref<1x32x32xf32, #tpu.memory_space<vmem>>, vector<1x32x32xf32>,
    return
  }
  func.func @transform_0(%arg0: i32) -> (i32, i32, i32) {
    %c0_i32 = arith.constant 0 : i32
    %c0_i32_0 = arith.constant 0 : i32
    %c0_i32_1 = arith.constant 0 : i32
    return %arg0, %c0_i32, %c0_i32_0 : i32, i32, i32
  }
  func.func @transform_1(%arg0: i32) -> (i32, i32, i32) {
    %c0_i32 = arith.constant 0 : i32
    %c0_i32_0 = arith.constant 0 : i32
    %c0_i32_1 = arith.constant 0 : i32
    %c0_i32_2 = arith.constant 0 : i32
    return %c0_i32, %c0_i32_0, %c0_i32_1 : i32, i32, i32
  }
  func.func @transform_2(%arg0: i32) -> (i32, i32) {
    %c0_i32 = arith.constant 0 : i32
    %c0_i32_0 = arith.constant 0 : i32
    %c0_i32_1 = arith.constant 0 : i32
    return %c0_i32, %c0_i32_0 : i32, i32
  }
  func.func @transform_3(%arg0: i32) -> (i32, i32) {
    %c0_i32 = arith.constant 0 : i32
    %c0_i32_0 = arith.constant 0 : i32
    %c0_i32_1 = arith.constant 0 : i32
    return %c0_i32, %c0_i32_0 : i32, i32
  }
  func.func @transform_4(%arg0: i32) -> (i32, i32) {
    %c0_i32 = arith.constant 0 : i32
    %c0_i32_0 = arith.constant 0 : i32
    %c0_i32_1 = arith.constant 0 : i32
    return %c0_i32, %c0_i32_0 : i32, i32
  }
  func.func @transform_5(%arg0: i32) -> (i32, i32, i32) {
    %c0_i32 = arith.constant 0 : i32
    %c0_i32_0 = arith.constant 0 : i32
    %c0_i32_1 = arith.constant 0 : i32
    %c0_i32_2 = arith.constant 0 : i32
    return %c0_i32, %c0_i32_0, %c0_i32_1 : i32, i32, i32
  }
  func.func @transform_6(%arg0: i32) -> (i32, i32) {
    %c0_i32 = arith.constant 0 : i32
    %c0_i32_0 = arith.constant 0 : i32
    %c0_i32_1 = arith.constant 0 : i32
    return %c0_i32, %c0_i32_0 : i32, i32
  }
  func.func @transform_7(%arg0: i32) -> (i32, i32) {
    %c0_i32 = arith.constant 0 : i32
    %c0_i32_0 = arith.constant 0 : i32
    %c0_i32_1 = arith.constant 0 : i32
    return %c0_i32, %c0_i32_0 : i32, i32
  }
  func.func @transform_8(%arg0: i32) -> (i32, i32) {
    %c0_i32 = arith.constant 0 : i32
    %c0_i32_0 = arith.constant 0 : i32
    %c0_i32_1 = arith.constant 0 : i32
    return %c0_i32, %c0_i32_0 : i32, i32
  }
  func.func @transform_9(%arg0: i32) -> (i32, i32, i32) {
    %c0_i32 = arith.constant 0 : i32
    %c0_i32_0 = arith.constant 0 : i32
    %c0_i32_1 = arith.constant 0 : i32
    return %arg0, %c0_i32, %c0_i32_0 : i32, i32, i32
  }
}

</mosaic_0001>

<bundles_post_ra>
// kernel: tpu_custom_call.1
= control target key start
LH: loop header
LB: loop body
LE: loop exit
PB: predicated region body
PF: predicated region fallthrough
CT: control target
= control target key end

     0   :  { %s2261_s0 = inlined_call_operand.hbm [shape: f32[2,32,32], index: 0, kind: input, shape index: {}, may-alias: {0,9}]   ;;  %s2262_s1 = inlined_call_operand.vmem [shape: f32[3,32,32], index: 1, kind: input, shape index: {}]   ;;  %s2263_s2 = inlined_call_operand.vmem [shape: f32[1,32], index: 2, kind: input, shape index: {}]   ;;  %s2264_s3 = inlined_call_operand.vmem [shape: f32[1,32], index: 3, kind: input, shape index: {}]   ;;  %s2265_s4 = inlined_call_operand.vmem [shape: f32[1,32], index: 4, kind: input, shape index: {}]   ;;  %s2266_s5 = inlined_call_operand.hbm [shape: f32[3,32,32], index: 5, kind: input, shape index: {}]   ;;  %s2267_s6 = inlined_call_operand.vmem [shape: f32[1,32], index: 6, kind: input, shape index: {}]   ;;  %s2268_s7 = inlined_call_operand.vmem [shape: f32[1,32], index: 7, kind: input, shape index: {}]   ;;  %s2269_s8 = inlined_call_operand.vmem [shape: f32[1,32], index: 8, kind: input, shape index: {}]   ;;  %s2270_s9 = inlined_call_operand.hbm [shape: f32[2,32,32], index: 9, kind: output, shape index: {}, may-alias: {0,9}]  }
   0x1   :  { %2274 = sst [smem:[#allocation13_spill]] %s2266_s5 }
   0x2   :  { %14 = vsyncpa [#allocation3], 0 }
   0x3   :  { %16 = vsyncpa [#allocation3 + $0x1], 0 }
   0x4   :  { %17 = vsyncpa [#allocation6], 0 }
   0x5   :  { %18 = vsyncpa [#allocation4], 0 }
   0x6   :  { %20 = vsyncpa [#allocation4 + $0x1], 0  ;;  %s1732_s30 = smov 0   ;;  %s1734_s10 = smov 0  }
   0x7   :  { %s1736_s11 = smov 0   ;;  %s1738_s12 = smov 0  }
   0x8 LB: > { %2275 = sst [smem:[#allocation11_spill]] %s1670_s11  ;;  %s1753_s13 = sadd.s32 4294967295, %s1674_s12   ;;  %s1674_s12 = sphi %s1738_s12, %s2290_s12   ;;  %s1670_s11 = sphi %s1736_s11, %s2287_s11   ;;  %s1666_s10 = sphi %s1734_s10, %s2289_s10   ;;  %s1662_s30 = sphi %s1732_s30, %s2288_s30  }
   0x9   : > { %s1373_s14 = sadd.s32 4294967294, %s1674_s12   ;;  %p46_p0 = scmp.ne.s32.totalorder %s1666_s10, %s1662_s30 }
   0xa   : > { %p47_p1 = scmp.eq.s32.totalorder %s1753_s13, 0  ;;  %p238_p2 = scmp.eq.s32.totalorder %s1753_s13, 1 }
   0xb   : > { %p244_p3 = scmp.eq.s32.totalorder %s1373_s14, 1  ;;  %p1374_p5 = scmp.ge.s32.totalorder %s1674_s12, 1 }
   0xc   : > { %p1762_p4 = por %p47_p1, %p46_p0  ;;  %p251_p7 = scmp.lt.s32.totalorder %s1674_s12, 3 }
   0xd   : > { %p1767_p6 = por %p244_p3, %p46_p0  ;;  %s2278_s5 = sld [smem:[#allocation13_spill]] }
   0xe   : > { %p1775_p8 = pnand %p1374_p5, %p251_p7  ;;  %s1676_s21 = smov [#allocation5]  }
   0xf   : > { %s276_s22 = sshll.u32 %s1676_s21, 4  ;;  %s1785_s23 = sadd.s32 1, %s1674_s12   ;;  %s277_s22 = int_to_ptr.vmem [resolvable:$true] %s276_s22 }
  0x10   : > { %p1447_p9 = pneg %p1775_p8  ;;  %s2271_s24 = smov 128  }
  0x11   : > { %s2272_s25 = smov 8   ;;  %s30_s26 = ssub.s32 %s1674_s12, %s1785_s23 }
  0x12   : > { %p1448_p10 = pnand %p1447_p9, %p47_p1  ;;  %s33_s27 = sadd.s32 1, %s1670_s11 }
  0x13   : > { %s274_s19 = sshll.u32 %s2278_s5, 4  ;;  %p31_p12 = scmp.eq.s32.totalorder %s30_s26, 0  ;;  %s275_s19 = int_to_ptr.hbm [resolvable:$true] %s274_s19 }
  0x14   : > { %1450 = dma.hbm_to_vmem [thread:$0]  (!%p1448_p10), %s275_s19, 1536, %s277_s22, [#allocation6], %s2271_s24, %s2271_s24, %s2272_s25  }
  0x15   : > { %p40_p13 = scmp.ne.s32.totalorder %s1670_s11, %s1666_s10  ;;  %p41_p0 = scmp.eq.s32.totalorder %s1674_s12, 0 }
  0x16   : > { %s1797_s28 = scalar_select %p31_p12, %s1670_s11, %s33_s27  }
  0x17   : > { %p1801_p3 = por %p238_p2, %p40_p13  ;;  %p1460_p5 = scmp.lt.s32.totalorder %s1674_s12, 2 }
  0x18   : > { %2280 = sst [smem:[#allocation12_spill]] %s1797_s28  ;;  %s299_s14 = sand.u32 1, %s1670_s11  }
  0x19   : > { %s1429_s17 = sshll.u32 %s1674_s12, 5  ;;  %p42_p7 = por %p41_p0, %p40_p13 }
  0x1a   : > { %s1377_s18 = sshll.u32 %s299_s14, 5  ;;  %s308_s19 = scalar_lea.hbm %s2261_s0, %s1429_s17 }
  0x1b   : > { %s309_s22 = sshll.u32 %s308_s19, 4  ;;  %s303_s26 = scalar_lea.vmem [#allocation2], %s1377_s18  ;;  %s310_s22 = int_to_ptr.hbm [resolvable:$true] %s309_s22 }
  0x1c   : > { %s311_s24 = sshll.u32 %s303_s26, 4  ;;  %p1811_p9 = pnand %p1460_p5, %p42_p7  ;;  %s312_s24 = int_to_ptr.vmem [resolvable:$true] %s311_s24 }
  0x1d   : > { %s300_s25 = scalar_lea.sflag [#allocation3], %s299_s14  ;;  %s1574_s28 = sshra.s32 %s310_s22, 4  ;;  %s1575_s28 = int_to_ptr.hbm [resolvable:$true] %s1574_s28 }
  0x1e   : > { %s1576_s11 = scalar_lea.hbm %s1575_s28, 32  ;;  %p1578_p10 = pneg %p1811_p9 }
  0x1f   : > { %p1577_p2 = scmp.ne.s32.totalorder %s1575_s28, %s1576_s11  ;;  %s1581_s18 = scalar_lea.hbm %s2261_s0, 64 }
  0x20   : > { %p1582_p0 = scmp.lt.s32.totalorder %s1575_s28, %s2261_s0  ;;  %p1583_p5 = scmp.lt.s32.totalorder %s1581_s18, %s1576_s11 }
  0x21   : > { %p1579_p12 = pnand %p1578_p10, %p1577_p2 }
  0x22   : > { %p1584_p7 = por %p1583_p5, %p1582_p0 }
  0x23   : > { %p1580_p13 = pneg %p1579_p12 }
  0x25   : > { %p1585_p11 = pnand %p1584_p7, %p1580_p13 }
  0x27   : > { %1588 = shalt.err (!%p1585_p11)
}
  0x28   : > { %s2283_s14 = smov 8   ;;  %s2284_s26 = smov 128  }
  0x29   : > { %1454 = dma.hbm_to_vmem [thread:$0]  (!%p1811_p9), %s310_s22, 512, %s312_s24, %s300_s25, %s2284_s26, %s2284_s26, %s2283_s14  }
  0x2a   : > { %323 = sbr.rel (%p1775_p8) target bundleno = 1022 (0x3fe), region = 56  ;;  %s1831_s5 = sand.u32 (!%p1775_p8), 1, %s1666_s10  }
  0x2b   : > { %s1381_s11 = sshll.u32 (!%p1775_p8), %s1831_s5, 5  ;;  %s326_s28 = scalar_lea.sflag (!%p1775_p8), [#allocation3], %s1831_s5 }
  0x2c   : > { %s1837_s17 = scalar_lea.vmem (!%p1775_p8), [#allocation2], %s1381_s11 }
  0x2f   : > { %1649 = dma.done.wait (%p1762_p4), %s326_s28, 512  }
  0x30   : > { %1651 = vsyncadd (%p1762_p4), %s326_s28, 4294966784 }
  0x31   : > { %1653 = dma.done.wait (%p47_p1), [#allocation6], 1536  }
  0x32   : > { %1655 = vsyncadd (%p47_p1), [#allocation6], 4294965760  ;;  %v1387_v0 = vld [vmem:[%s2262_s1 + $0x38] sm:$0xff]  ;;  %v1386_v2 = vld [vmem:[%s2262_s1 + $0x30] sm:$0xff]  ;;  %vm378_vm0 = vcmask 1040384   ;;  %vm407_vm1 = vcmask 261120  }
  0x33   : > { %v401_v1 = vld [vmem:[%s2262_s1 + $0x18] sm:$0xff]  ;;  %1431 = vmatpush.msra.mxu2 %v1387_v0  ;;  %v400_v3 = vld [vmem:[%s2262_s1 + $0x10] sm:$0xff]  ;;  %v1385_v4 = vld [vmem:[%s2262_s1 + $0x28] sm:$0xff]  ;;  %428 = vmatpush.msra.mxu0 %v1387_v0  ;;  %vm388_vm2 = vcmask 1046528   ;;  %v1679_v61 = vmov 32.0   ;;  %s1624_s14 = scalar_lea.hbm %s2270_s9, 64 }
  0x34   : > { %1435 = vmatpush.msra.mxu3 %v401_v1  ;;  %v399_v5 = vld [vmem:[%s2262_s1 + $0x8] sm:$0xff]  ;;  %v372_v6 = vld [vmem:[%s1837_s17 + $0x10] sm:$0xff]  ;;  %466 = vmatpush.msra.mxu1 %v401_v1  ;;  %v1384_v9 = vld [vmem:[%s2262_s1 + $0x20] sm:$0xff]  ;;  %1507 = vrcp.f32 %v1679_v61 }
  0x35   : > { %1432 = vmatpush.msra.mxu2 %v1386_v2  ;;  %v371_v7 = vld [vmem:[%s1837_s17 + $0x8] sm:$0xff]  ;;  %v382_v8 = vrot.slane %v372_v6, 7  ;;  %v398_v10 = vld [vmem:[%s2262_s1] sm:$0xff]  ;;  %429 = vmatpush.msra.mxu0 %v1386_v2  ;;  %v1399_v12 = vld [vmem:[%s2262_s1 + $0x58] sm:$0xff]  ;;  %v392_v27 = vrot.slane %v372_v6, 1 }
  0x36   : > { %1436 = vmatpush.msra.mxu3 %v400_v3  ;;  %v380_v11 = vrot.slane %v371_v7, 7  ;;  %467 = vmatpush.msra.mxu1 %v400_v3  ;;  %v1877_v13 = vld [vmem:[%s1837_s17] sm:$0xff]  ;;  %v373_v15 = vld [vmem:[%s1837_s17 + $0x18] sm:$0xff]  ;;  %v1398_v17 = vld [vmem:[%s2262_s1 + $0x50] sm:$0xff]  ;;  %v390_v25 = vrot.slane %v371_v7, 1 }
  0x37   : > { %1433 = vmatpush.msra.mxu2 %v1385_v4  ;;  %430 = vmatpush.msra.mxu0 %v1385_v4  ;;  %v379_v16 = vrot.slane %v1877_v13, 7  ;;  %v384_v19 = vrot.slane %v373_v15, 7  ;;  %v1397_v20 = vld [vmem:[%s2262_s1 + $0x48] sm:$0xff]  ;;  %v1396_v21 = vld [vmem:[%s2262_s1 + $0x40] sm:$0xff]  ;;  %v389_v24 = vrot.slane %v1877_v13, 1  ;;  %v394_v29 = vrot.slane %v373_v15, 1 }
  0x38   : > { %1437 = vmatpush.msra.mxu3 %v399_v5  ;;  %v383_v14 = vsel %vm378_vm0, %v380_v11, %v382_v8  ;;  %468 = vmatpush.msra.mxu1 %v399_v5  ;;  %v393_v28 = vsel %vm388_vm2, %v390_v25, %v392_v27  ;;  %v1501_v37 = vld [vmem:[%s2263_s2] ss:$0 sm:$0xff] }
  0x39   : > { %1434 = vmatpush.msra.mxu2 %v1384_v9  ;;  %v387_v18 = vsel %vm378_vm0, 0.0, %v379_v16  ;;  %431 = vmatpush.msra.mxu0 %v1384_v9  ;;  %v385_v22 = vsel %vm378_vm0, %v382_v8, %v384_v19  ;;  %v381_v23 = vsel %vm378_vm0, %v379_v16, %v380_v11  ;;  %v391_v26 = vsel %vm388_vm2, %v389_v24, %v390_v25 }
  0x3a   : > { %1438 = vmatpush.msra.mxu3 %v398_v10  ;;  %1390 = vmatmul.msk.f32.vlgmr.msra.gmra.mxu2 %vm407_vm1, %v372_v6  ;;  %v395_v30 = vsel %vm388_vm2, %v392_v27, %v394_v29  ;;  %v397_v31 = vsel %vm388_vm2, %v394_v29, 0.0  ;;  %v1508_v62 = vpop.eup %1507 }
  0x3b   : > { %1394 = vmatmul.msk.f32.vlgmr.msra.gmra.mxu3 %vm407_vm1, %v383_v14  ;;  %509 = vmatpush.msrb.mxu2 %v1399_v12  ;;  %v551_v63 = vmul.f32 32.0, %v1508_v62  ;;  %vm555_vm3 = vweird.f32 %v1508_v62 }
  0x3c   : > { %469 = vmatpush.msra.mxu1 %v398_v10  ;;  %1388 = vmatmul.msk.f32.vlgmr.msra.gmra.mxu0 %vm407_vm1, %v1877_v13 }
  0x3d   : > { %510 = vmatpush.msrb.mxu2 %v1398_v17  ;;  %1392 = vmatmul.msk.f32.vlgmr.msra.gmra.mxu1 %vm407_vm1, %v387_v18  ;;  %v552_v0 = vsub.f32 1.0, %v551_v63 }
  0x3f   : > { %511 = vmatpush.msrb.mxu2 %v1397_v20  ;;  %v553_v1 = vmul.f32 %v1508_v62, %v552_v0 }
  0x41   : > { %512 = vmatpush.msrb.mxu2 %v1396_v21  ;;  %v554_v2 = vadd.f32 %v1508_v62, %v553_v1 }
  0x42   : > { %1391 = vmatmul.msk.f32.gmra.mxu2 %vm407_vm1, %v373_v15 }
  0x43   : > { %1395 = vmatmul.msk.f32.gmra.mxu3 %vm407_vm1, %v385_v22  ;;  %v1919_v3 = vsel %vm555_vm3, %v1508_v62, %v554_v2 }
  0x44   : > { %1389 = vmatmul.msk.f32.gmra.mxu0 %vm407_vm1, %v371_v7 }
  0x45   : > { %1393 = vmatmul.msk.f32.gmra.mxu1 %vm407_vm1, %v381_v23 }
  0x4a   : > { %1400 = vmatmul.msk.f32.vlgmr.msrb.gmra.mxu2 %vm407_vm1, %v391_v26 }
  0x52   : > { %1401 = vmatmul.msk.f32.gmra.mxu2 %vm407_vm1, %v393_v28 }
  0x5a   : > { %1402 = vmatmul.msk.f32.gmra.mxu2 %vm407_vm1, %v395_v30 }
  0x62   : > { %1403 = vmatmul.msk.f32.gmra.mxu2 %vm407_vm1, %v397_v31 }
  0xb9   : > { %v433_v33 = vpop.f32.mrf.mxu0 }
  0xba   : > { %v471_v35 = vpop.f32.mrf.mxu1 }
  0xbb   : > { %v472_v36 = vadd.f32 %v471_v35, %v433_v33  ;;  %v854_v35 = vld [vmem:[#allocation5 + $0x30] sm:$0xff] }
  0xbd   : > { %v439_v32 = vpop.f32.mrf.mxu2 }
  0xbe   : > { %v477_v47 = vpop.f32.mrf.mxu3 }
  0xbf   : > { %v478_v50 = vadd.f32 %v477_v47, %v439_v32  ;;  %v852_v47 = vld [vmem:[#allocation5 + $0x20] sm:$0xff] }
  0xc1   : > { %v436_v40 = vpop.f32.mrf.mxu0 }
  0xc2   : > { %v474_v41 = vpop.f32.mrf.mxu1 }
  0xc3   : > { %v475_v44 = vadd.f32 %v474_v41, %v436_v40  ;;  %v849_v40 = vld [vmem:[#allocation5 + $0x10] sm:$0xff] }
  0xc5   : > { %v442_v34 = vpop.f32.mrf.mxu2 }
  0xc6   : > { %v480_v54 = vpop.f32.mrf.mxu3 }
  0xc7   : > { %v481_v56 = vadd.f32 %v480_v54, %v442_v34  ;;  %v855_v34 = vld [vmem:[#allocation5 + $0x38] sm:$0xff]  ;;  %v1957_v54 = vld [vmem:[%s2265_s4] ss:$0 sm:$0xff] }
  0xc8   : > { %876 = vmatpush.msrb.mxu3 %v855_v34 }
  0xca   : > { %877 = vmatpush.msrb.mxu3 %v854_v35 }
  0xcd   : > { %v514_v38 = vpop.f32.mrf.mxu2 }
  0xce   : > { %v526_v39 = vadd.f32 %v514_v38, %v472_v36  ;;  %v850_v36 = vld [vmem:[#allocation5 + $0x18] sm:$0xff] }
  0xcf   : > { %914 = vmatpush.msrb.mxu0 %v850_v36 }
  0xd0   : > { %v534_v42 = vadd.f32 %v1501_v37, %v526_v39  ;;  %v935_v39 = vld [vmem:[#allocation5 + $0x58] sm:$0xff] }
  0xd1   : > { %957 = vmatpush.msrb.mxu1 %v935_v39  ;;  %915 = vmatpush.msrb.mxu0 %v849_v40 }
  0xd2   : > { %v538_v43 = vsel %vm407_vm1, %v534_v42, 0.0 }
  0xd3   : > { %539 = vadd.xlane.f32.xlu0 %v538_v43  ;;  %v934_v43 = vld [vmem:[#allocation5 + $0x50] sm:$0xff] }
  0xd4   : > { %958 = vmatpush.msrb.mxu1 %v934_v43 }
  0xd5   : > { %v517_v45 = vpop.f32.mrf.mxu2 }
  0xd6   : > { %v527_v46 = vadd.f32 %v517_v45, %v475_v44 }
  0xd8   : > { %v535_v48 = vadd.f32 %v1501_v37, %v527_v46 }
  0xda   : > { %v541_v49 = vsel %vm407_vm1, %v535_v48, 0.0 }
  0xdb   : > { %542 = vadd.xlane.f32.xlu0 %v541_v49 }
  0xdd   : > { %v520_v51 = vpop.f32.mrf.mxu2 }
  0xde   : > { %v528_v52 = vadd.f32 %v520_v51, %v478_v50  ;;  %v1951_v50 = vld [vmem:[%s2264_s3] ss:$0 sm:$0xff] }
  0xe0   : > { %v536_v53 = vadd.f32 %v1501_v37, %v528_v52 }
  0xe2   : > { %v544_v55 = vsel %vm407_vm1, %v536_v53, 0.0 }
  0xe3   : > { %545 = vadd.xlane.f32.xlu1 %v544_v55 }
  0xe5   : > { %v523_v57 = vpop.f32.mrf.mxu2 }
  0xe6   : > { %v529_v58 = vadd.f32 %v523_v57, %v481_v56 }
  0xe8   : > { %v537_v59 = vadd.f32 %v1501_v37, %v529_v58 }
  0xea   : > { %v547_v60 = vsel %vm407_vm1, %v537_v59, 0.0 }
  0xeb   : > { %548 = vadd.xlane.f32.xlu1 %v547_v60 }
 0x146   : > { %v540_v4 = vpop.xlane.xlu0 %539 }
 0x147   : > { %v557_v5 = vmul.f32 %v1919_v3, %v540_v4 }
 0x149   : > { %v1922_v6 = vsub.f32 %v534_v42, %v557_v5  ;;  %v853_v42 = vld [vmem:[#allocation5 + $0x28] sm:$0xff] }
 0x14a   : > { %878 = vmatpush.msrb.mxu3 %v853_v42 }
 0x14b   : > { %v565_v7 = vmul.f32 %v1922_v6, %v1922_v6 }
 0x14c   : > { %879 = vmatpush.msrb.mxu3 %v852_v47 }
 0x14d   : > { %v569_v8 = vsel %vm407_vm1, %v565_v7, 0.0 }
 0x14e   : > { %570 = vadd.xlane.f32.xlu2 %v569_v8  ;;  %v543_v9 = vpop.xlane.xlu0 %542 }
 0x14f   : > { %v558_v10 = vmul.f32 %v1919_v3, %v543_v9 }
 0x151   : > { %v1928_v11 = vsub.f32 %v535_v48, %v558_v10 }
 0x153   : > { %v566_v12 = vmul.f32 %v1928_v11, %v1928_v11 }
 0x155   : > { %v572_v14 = vsel %vm407_vm1, %v566_v12, 0.0 }
 0x156   : > { %v546_v15 = vpop.xlane.xlu1 %545  ;;  %573 = vadd.xlane.f32.xlu2 %v572_v14 }
 0x157   : > { %v559_v16 = vmul.f32 %v1919_v3, %v546_v15 }
 0x159   : > { %v1934_v17 = vsub.f32 %v536_v53, %v559_v16 }
 0x15b   : > { %v567_v18 = vmul.f32 %v1934_v17, %v1934_v17 }
 0x15d   : > { %v575_v19 = vsel %vm407_vm1, %v567_v18, 0.0 }
 0x15e   : > { %v549_v20 = vpop.xlane.xlu1 %548  ;;  %576 = vadd.xlane.f32.xlu0 %v575_v19 }
 0x15f   : > { %v560_v21 = vmul.f32 %v1919_v3, %v549_v20 }
 0x161   : > { %v1940_v22 = vsub.f32 %v537_v59, %v560_v21 }
 0x163   : > { %v568_v23 = vmul.f32 %v1940_v22, %v1940_v22 }
 0x165   : > { %v578_v24 = vsel %vm407_vm1, %v568_v23, 0.0 }
 0x166   : > { %579 = vadd.xlane.f32.xlu1 %v578_v24 }
 0x1c1   : > { %v571_v25 = vpop.xlane.xlu2 %570 }
 0x1c2   : > { %v581_v26 = vmul.f32 %v571_v25, %v1919_v3 }
 0x1c4   : > { %v585_v27 = vadd.f32 1e-05, %v581_v26 }
 0x1c6   : > { %1509 = vrsqrt.f32 %v585_v27  ;;  %vm595_vm5 = vweird.f32 %v585_v27 }
 0x1c9   : > { %v574_v28 = vpop.xlane.xlu2 %573 }
 0x1ca   : > { %v582_v29 = vmul.f32 %v574_v28, %v1919_v3 }
 0x1cc   : > { %v1510_v30 = vpop.eup %1509  ;;  %v586_v31 = vadd.f32 1e-05, %v582_v29 }
 0x1cd   : > { %v590_v32 = vmul.f32 %v1510_v30, %v585_v27  ;;  %vm596_vm4 = vweird.f32 %v1510_v30 }
 0x1ce   : > { %1511 = vrsqrt.f32 %v586_v31  ;;  %vm597_vm6 = vmor %vm595_vm5, %vm596_vm4  ;;  %vm605_vm8 = vweird.f32 %v586_v31 }
 0x1cf   : > { %v591_v33 = vmul.f32 %v1510_v30, %v590_v32 }
 0x1d1   : > { %v592_v37 = vmul.f32 0.5, %v591_v33  ;;  %v577_v38 = vpop.xlane.xlu0 %576 }
 0x1d2   : > { %v583_v41 = vmul.f32 %v577_v38, %v1919_v3 }
 0x1d3   : > { %v593_v44 = vsub.f32 1.5, %v592_v37 }
 0x1d4   : > { %v1512_v45 = vpop.eup %1511  ;;  %v587_v46 = vadd.f32 1e-05, %v583_v41 }
 0x1d5   : > { %v594_v48 = vmul.f32 %v1510_v30, %v593_v44  ;;  %v600_v49 = vmul.f32 %v1512_v45, %v586_v31  ;;  %vm606_vm7 = vweird.f32 %v1512_v45 }
 0x1d6   : > { %1513 = vrsqrt.f32 %v587_v46  ;;  %vm607_vm9 = vmor %vm605_vm8, %vm606_vm7  ;;  %vm615_vm11 = vweird.f32 %v587_v46 }
 0x1d7   : > { %v598_v51 = vsel %vm597_vm6, %v1510_v30, %v594_v48  ;;  %v601_v52 = vmul.f32 %v1512_v45, %v600_v49  ;;  %v848_v48 = vld [vmem:[#allocation5 + $0x8] sm:$0xff]  ;;  %v847_v49 = vld [vmem:[#allocation5] sm:$0xff] }
 0x1d8   : > { %v629_v53 = vmul.f32 %v598_v51, %v1922_v6  ;;  %916 = vmatpush.msrb.mxu0 %v848_v48 }
 0x1d9   : > { %v602_v55 = vmul.f32 0.5, %v601_v52  ;;  %v580_v56 = vpop.xlane.xlu1 %579 }
 0x1da   : > { %v637_v57 = vmul.f32 %v1951_v50, %v629_v53  ;;  %v584_v58 = vmul.f32 %v580_v56, %v1919_v3  ;;  %917 = vmatpush.msrb.mxu0 %v847_v49 }
 0x1db   : > { %v603_v59 = vsub.f32 1.5, %v602_v55 }
 0x1dc   : > { %v1514_v60 = vpop.eup %1513  ;;  %v588_v61 = vadd.f32 1e-05, %v584_v58  ;;  %v1962_v62 = vadd.f32 %v1957_v54, %v637_v57 }
 0x1dd   : > { %v604_v63 = vmul.f32 %v1512_v45, %v603_v59  ;;  %v610_v0 = vmul.f32 %v1514_v60, %v587_v46  ;;  %vm616_vm10 = vweird.f32 %v1514_v60  ;;  %v933_v59 = vld [vmem:[#allocation5 + $0x48] sm:$0xff] }
 0x1de   : > { %1515 = vrsqrt.f32 %v588_v61  ;;  %v1965_v1 = vmul.f32 0.70710677, %v1962_v62  ;;  %vm617_vm12 = vmor %vm615_vm11, %vm616_vm10  ;;  %vm625_vm14 = vweird.f32 %v588_v61  ;;  %959 = vmatpush.msrb.mxu1 %v933_v59 }
 0x1df   : > { %v608_v2 = vsel %vm607_vm9, %v1512_v45, %v604_v63  ;;  %v611_v4 = vmul.f32 %v1514_v60, %v610_v0 }
 0x1e0   : > { %v630_v5 = vmul.f32 %v608_v2, %v1928_v11  ;;  %v657_v6 = vmul.f32 %v1965_v1, %v1965_v1 }
 0x1e1   : > { %v612_v7 = vmul.f32 0.5, %v611_v4 }
 0x1e2   : > { %v1970_v8 = vmin.f32 %v657_v6, 16.0  ;;  %v638_v9 = vmul.f32 %v1951_v50, %v630_v5 }
 0x1e3   : > { %v613_v10 = vsub.f32 1.5, %v612_v7 }
 0x1e4   : > { %v1516_v12 = vpop.eup %1515  ;;  %v659_v14 = vmul.f32 2.1237322e-06, %v1970_v8  ;;  %v670_v15 = vmul.f32 3.8918573e-05, %v1970_v8  ;;  %v1976_v16 = vadd.f32 %v1957_v54, %v638_v9 }
 0x1e5   : > { %v614_v18 = vmul.f32 %v1514_v60, %v613_v10  ;;  %v620_v11 = vmul.f32 %v1516_v12, %v588_v61  ;;  %vm626_vm13 = vweird.f32 %v1516_v12 }
 0x1e6   : > { %v660_v19 = vadd.f32 0.00028619796, %v659_v14  ;;  %v671_v20 = vadd.f32 0.001143296, %v670_v15  ;;  %v1979_v24 = vmul.f32 0.70710677, %v1976_v16  ;;  %vm627_vm15 = vmor %vm625_vm14, %vm626_vm13 }
 0x1e7   : > { %v618_v21 = vsel %vm617_vm12, %v1514_v60, %v614_v18  ;;  %v621_v23 = vmul.f32 %v1516_v12, %v620_v11  ;;  %v932_v60 = vld [vmem:[#allocation5 + $0x40] sm:$0xff] }
 0x1e8   : > { %v631_v25 = vmul.f32 %v618_v21, %v1934_v17  ;;  %v661_v26 = vmul.f32 %v660_v19, %v1970_v8  ;;  %v672_v27 = vmul.f32 %v671_v20, %v1970_v8  ;;  %v697_v29 = vmul.f32 %v1979_v24, %v1979_v24  ;;  %960 = vmatpush.msrb.mxu1 %v932_v60 }
 0x1e9   : > { %v622_v28 = vmul.f32 0.5, %v621_v23 }
 0x1ea   : > { %v662_v30 = vadd.f32 0.0036580483, %v661_v26  ;;  %v673_v31 = vadd.f32 0.014752088, %v672_v27  ;;  %v639_v32 = vmul.f32 %v1951_v50, %v631_v25  ;;  %v1987_v34 = vmin.f32 %v697_v29, 16.0 }
 0x1eb   : > { %v623_v33 = vsub.f32 1.5, %v622_v28 }
 0x1ec   : > { %v674_v35 = vmul.f32 %v673_v31, %v1970_v8  ;;  %v1991_v17 = vadd.f32 %v1957_v54, %v639_v32  ;;  %v663_v37 = vmul.f32 %v662_v30, %v1970_v8  ;;  %v699_v38 = vmul.f32 2.1237322e-06, %v1987_v34 }
 0x1ed   : > { %v624_v36 = vmul.f32 %v1516_v12, %v623_v33  ;;  %v710_v39 = vmul.f32 3.8918573e-05, %v1987_v34 }
 0x1ee   : > { %v675_v40 = vadd.f32 0.112945676, %v674_v35  ;;  %v700_v42 = vadd.f32 0.00028619796, %v699_v38  ;;  %v1997_v44 = vmul.f32 0.70710677, %v1991_v17 }
 0x1ef   : > { %v628_v41 = vsel %vm627_vm15, %v1516_v12, %v624_v36  ;;  %v711_v43 = vadd.f32 0.001143296, %v710_v39  ;;  %v664_v47 = vadd.f32 0.05243302, %v663_v37 }
 0x1f0   : > { %v632_v45 = vmul.f32 %v628_v41, %v1940_v22  ;;  %v676_v46 = vmul.f32 %v675_v40, %v1970_v8  ;;  %v701_v51 = vmul.f32 %v700_v42, %v1987_v34  ;;  %v737_v53 = vmul.f32 %v1997_v44, %v1997_v44 }
 0x1f1   : > { %v712_v52 = vmul.f32 %v711_v43, %v1987_v34  ;;  %v665_v0 = vmul.f32 %v664_v47, %v1970_v8 }
 0x1f2   : > { %v677_v55 = vadd.f32 0.4994258, %v676_v46  ;;  %v640_v56 = vmul.f32 %v1951_v50, %v632_v45  ;;  %v2006_v58 = vmin.f32 %v737_v53, 16.0  ;;  %v702_v61 = vadd.f32 0.0036580483, %v701_v51 }
 0x1f3   : > { %v713_v57 = vadd.f32 0.014752088, %v712_v52  ;;  %v666_v10 = vadd.f32 0.18741608, %v665_v0 }
 0x1f4   : > { %v678_v22 = vmul.f32 %v677_v55, %v1970_v8  ;;  %v2010_v63 = vadd.f32 %v1957_v54, %v640_v56  ;;  %v739_v4 = vmul.f32 2.1237322e-06, %v2006_v58  ;;  %v750_v5 = vmul.f32 3.8918573e-05, %v2006_v58 }
 0x1f5   : > { %v714_v2 = vmul.f32 %v713_v57, %v1987_v34  ;;  %v703_v54 = vmul.f32 %v702_v61, %v1987_v34  ;;  %v667_v23 = vmul.f32 %v666_v10, %v1970_v8 }
 0x1f6   : > { %v679_v50 = vadd.f32 1.0, %v678_v22  ;;  %v2017_v6 = vmul.f32 0.70710677, %v2010_v63  ;;  %v740_v9 = vadd.f32 0.00028619796, %v739_v4 }
 0x1f7   : > { %v715_v7 = vadd.f32 0.112945676, %v714_v2  ;;  %v751_v15 = vadd.f32 0.001143296, %v750_v5  ;;  %v704_v19 = vadd.f32 0.05243302, %v703_v54 }
 0x1f8   : > { %1517 = vrcp.f32 %v679_v50  ;;  %v741_v14 = vmul.f32 %v740_v9, %v2006_v58  ;;  %v777_v18 = vmul.f32 %v2017_v6, %v2017_v6  ;;  %v668_v38 = vadd.f32 1.1283791, %v667_v23 }
 0x1f9   : > { %v716_v12 = vmul.f32 %v715_v7, %v1987_v34  ;;  %v752_v20 = vmul.f32 %v751_v15, %v2006_v58  ;;  %v705_v33 = vmul.f32 %v704_v19, %v1987_v34  ;;  %v689_v8 = vand.u32 2147483647, %v679_v50 }
 0x1fa   : > { %v2025_v21 = vmin.f32 %v777_v18, 16.0  ;;  %v742_v26 = vadd.f32 0.0036580483, %v741_v14  ;;  %v691_v40 = vand.u32 2147483648, %v679_v50  ;;  %vm685_vm4 = vweird.f32 %v679_v50 }
 0x1fb   : > { %v717_v11 = vadd.f32 0.4994258, %v716_v12  ;;  %v753_v28 = vadd.f32 0.014752088, %v752_v20  ;;  %v706_v47 = vadd.f32 0.18741608, %v705_v33  ;;  %v669_v52 = vmul.f32 %v668_v38, %v1965_v1 }
 0x1fc   : > { %v779_v29 = vmul.f32 2.1237322e-06, %v2025_v21  ;;  %v790_v30 = vmul.f32 3.8918573e-05, %v2025_v21  ;;  %v743_v41 = vmul.f32 %v742_v26, %v2006_v58  ;;  %v692_v53 = vor.u32 1.1754944e-38, %v691_v40 }
 0x1fd   : > { %v718_v25 = vmul.f32 %v717_v11, %v1987_v34  ;;  %v754_v35 = vmul.f32 %v753_v28, %v2006_v58  ;;  %vm690_vm6 = vcmp.eq.f32.partialorder %v689_v8, 8.507059e+37  ;;  %v707_v0 = vmul.f32 %v706_v47, %v1987_v34 }
 0x1fe   : > { %v1518_v27 = vpop.eup %1517  ;;  %v780_v36 = vadd.f32 0.00028619796, %v779_v29  ;;  %v791_v37 = vadd.f32 0.001143296, %v790_v30  ;;  %v744_v55 = vadd.f32 0.05243302, %v743_v41 }
 0x1ff   : > { %v681_v31 = vmul.f32 %v1518_v27, %v679_v50  ;;  %v719_v32 = vadd.f32 1.0, %v718_v25  ;;  %v755_v42 = vadd.f32 0.112945676, %v754_v35  ;;  %vm686_vm3 = vweird.f32 %v1518_v27 }
 0x200   : > { %v781_v45 = vmul.f32 %v780_v36, %v2025_v21  ;;  %v792_v46 = vmul.f32 %v791_v37, %v2025_v21  ;;  %vm687_vm5 = vmor %vm685_vm4, %vm686_vm3  ;;  %v745_v9 = vmul.f32 %v744_v55, %v2006_v58  ;;  %v708_v15 = vadd.f32 1.1283791, %v707_v0 }
 0x201   : > { %v682_v39 = vsub.f32 1.0, %v681_v31  ;;  %1519 = vrcp.f32 %v719_v32  ;;  %v756_v48 = vmul.f32 %v755_v42, %v2006_v58  ;;  %v731_v1 = vand.u32 2147483648, %v719_v32 }
 0x202   : > { %v793_v51 = vadd.f32 0.014752088, %v792_v46  ;;  %v782_v59 = vadd.f32 0.0036580483, %v781_v45  ;;  %v729_v11 = vand.u32 2147483647, %v719_v32  ;;  %vm725_vm8 = vweird.f32 %v719_v32 }
 0x203   : > { %v683_v43 = vmul.f32 %v1518_v27, %v682_v39  ;;  %v757_v56 = vadd.f32 0.4994258, %v756_v48  ;;  %v649_v34 = vmul.f32 0.5, %v1962_v62  ;;  %v746_v23 = vadd.f32 0.18741608, %v745_v9 }
 0x204   : > { %v794_v60 = vmul.f32 %v793_v51, %v2025_v21  ;;  %v783_v12 = vmul.f32 %v782_v59, %v2025_v21  ;;  %v709_v29 = vmul.f32 %v708_v15, %v1979_v24  ;;  %vm730_vm10 = vcmp.eq.f32.partialorder %v729_v11, 8.507059e+37 }
 0x205   : > { %v684_v49 = vadd.f32 %v1518_v27, %v683_v43  ;;  %v758_v50 = vmul.f32 %v757_v56, %v2006_v58  ;;  %v747_v36 = vmul.f32 %v746_v23, %v2006_v58  ;;  %v650_v40 = vmul.f32 0.5, %v1976_v16 }
 0x206   : > { %v795_v5 = vadd.f32 0.112945676, %v794_v60  ;;  %v784_v28 = vadd.f32 0.05243302, %v783_v12 }
 0x207   : > { %v1520_v57 = vpop.eup %1519  ;;  %v688_v22 = vsel %vm687_vm5, %v1518_v27, %v684_v49  ;;  %v759_v10 = vadd.f32 1.0, %v758_v50  ;;  %v732_v27 = vor.u32 1.1754944e-38, %v731_v1  ;;  %v748_v42 = vadd.f32 1.1283791, %v747_v36 }
 0x208   : > { %v693_v61 = vsel %vm690_vm6, %v692_v53, %v688_v22  ;;  %v721_v2 = vmul.f32 %v1520_v57, %v719_v32  ;;  %v796_v14 = vmul.f32 %v795_v5, %v2025_v21  ;;  %vm726_vm7 = vweird.f32 %v1520_v57 }
 0x209   : > { %v694_v4 = vmul.f32 %v693_v61, %v669_v52  ;;  %1521 = vrcp.f32 %v759_v10  ;;  %vm727_vm9 = vmor %vm725_vm8, %vm726_vm7  ;;  %v785_v39 = vmul.f32 %v784_v28, %v2025_v21  ;;  %v769_v45 = vand.u32 2147483647, %v759_v10 }
 0x20a   : > { %v722_v7 = vsub.f32 1.0, %v721_v2  ;;  %v797_v25 = vadd.f32 0.4994258, %v796_v14  ;;  %v771_v46 = vand.u32 2147483648, %v759_v10  ;;  %vm765_vm12 = vweird.f32 %v759_v10 }
 0x20b   : > { %v1404_v54 = vclamps-f32 %v694_v4, 1.0  ;;  %v786_v47 = vadd.f32 0.18741608, %v785_v39  ;;  %v749_v56 = vmul.f32 %v748_v42, %v1997_v44  ;;  %vm770_vm14 = vcmp.eq.f32.partialorder %v769_v45, 8.507059e+37 }
 0x20c   : > { %v723_v18 = vmul.f32 %v1520_v57, %v722_v7  ;;  %v798_v31 = vmul.f32 %v797_v25, %v2025_v21  ;;  %v772_v16 = vor.u32 1.1754944e-38, %v771_v46  ;;  %v652_v25 = vmul.f32 0.5, %v2010_v63 }
 0x20d   : > { %v817_v19 = vadd.f32 1.0, %v1404_v54 }
 0x20e   : > { %v724_v20 = vadd.f32 %v1520_v57, %v723_v18  ;;  %v799_v32 = vadd.f32 1.0, %v798_v31 }
 0x20f   : > { %v821_v26 = vmul.f32 %v817_v19, %v649_v34  ;;  %v1522_v37 = vpop.eup %1521 }
 0x210   : > { %v728_v30 = vsel %vm727_vm9, %v1520_v57, %v724_v20  ;;  %v761_v8 = vmul.f32 %v1522_v37, %v759_v10  ;;  %1523 = vrcp.f32 %v799_v32  ;;  %vm766_vm11 = vweird.f32 %v1522_v37 }
 0x211   : > { %1408 = vmatmul.msk.f32.vlgmr.msrb.gmra.mxu3 %vm407_vm1, %v821_v26  ;;  %v829_v33 = vrot.slane %v821_v26, 7  ;;  %v733_v62 = vsel %vm730_vm10, %v732_v27, %v728_v30  ;;  %v838_v51 = vrot.slane %v821_v26, 1  ;;  %vm767_vm13 = vmor %vm765_vm12, %vm766_vm11  ;;  %v787_v57 = vmul.f32 %v786_v47, %v2025_v21 }
 0x212   : > { %v734_v35 = vmul.f32 %v733_v62, %v709_v29  ;;  %v762_v43 = vsub.f32 1.0, %v761_v8  ;;  %v811_v44 = vand.u32 2147483648, %v799_v32  ;;  %v809_v1 = vand.u32 2147483647, %v799_v32 }
 0x213   : > { %v837_v38 = vsel %vm378_vm0, 0.0, %v829_v33  ;;  %v788_v50 = vadd.f32 1.1283791, %v787_v57  ;;  %v651_v21 = vmul.f32 0.5, %v1991_v17  ;;  %vm805_vm3 = vweird.f32 %v799_v32 }
 0x214   : > { %1412 = vmatmul.msk.f32.vlgmr.msrb.gmra.mxu0 %vm407_vm1, %v837_v38  ;;  %v1405_v24 = vclamps-f32 %v734_v35, 1.0  ;;  %v763_v48 = vmul.f32 %v1522_v37, %v762_v43  ;;  %v812_v10 = vor.u32 1.1754944e-38, %v811_v44  ;;  %vm810_vm5 = vcmp.eq.f32.partialorder %v809_v1, 8.507059e+37  ;;  %v1504_v35 = vld [vmem:[%s2267_s6] ss:$0 sm:$0xff] }
 0x215   : > { %v789_v14 = vmul.f32 %v788_v50, %v2017_v6 }
 0x216   : > { %v818_v41 = vadd.f32 1.0, %v1405_v24  ;;  %v764_v53 = vadd.f32 %v1522_v37, %v763_v48  ;;  %v1524_v55 = vpop.eup %1523 }
 0x217   : > { %v801_v61 = vmul.f32 %v1524_v55, %v799_v32  ;;  %vm806_vm15 = vweird.f32 %v1524_v55 }
 0x218   : > { %v822_v58 = vmul.f32 %v818_v41, %v650_v40  ;;  %v768_v60 = vsel %vm767_vm13, %v1522_v37, %v764_v53  ;;  %vm807_vm4 = vmor %vm805_vm3, %vm806_vm15 }
 0x219   : > { %v773_v0 = vsel %vm770_vm14, %v772_v16, %v768_v60  ;;  %v802_v4 = vsub.f32 1.0, %v801_v61 }
 0x21a   : > { %1409 = vmatmul.msk.f32.gmra.mxu3 %vm407_vm1, %v822_v58  ;;  %v830_v49 = vrot.slane %v822_v58, 7  ;;  %v839_v52 = vrot.slane %v822_v58, 1  ;;  %v774_v2 = vmul.f32 %v773_v0, %v749_v56 }
 0x21b   : > { %v803_v7 = vmul.f32 %v1524_v55, %v802_v4 }
 0x21c   : > { %v831_v22 = vsel %vm378_vm0, %v829_v33, %v830_v49  ;;  %v840_v59 = vsel %vm388_vm2, %v838_v51, %v839_v52  ;;  %v1406_v5 = vclamps-f32 %v774_v2, 1.0 }
 0x21d   : > { %1413 = vmatmul.msk.f32.gmra.mxu0 %vm407_vm1, %v831_v22  ;;  %1416 = vmatmul.msk.f32.vlgmr.msrb.gmra.mxu1 %vm407_vm1, %v840_v59  ;;  %v804_v54 = vadd.f32 %v1524_v55, %v803_v7 }
 0x21e   : > { %v819_v9 = vadd.f32 1.0, %v1406_v5 }
 0x21f   : > { %v808_v15 = vsel %vm807_vm4, %v1524_v55, %v804_v54 }
 0x220   : > { %v823_v12 = vmul.f32 %v819_v9, %v651_v21  ;;  %v813_v18 = vsel %vm810_vm5, %v812_v10, %v808_v15 }
 0x221   : > { %v814_v19 = vmul.f32 %v813_v18, %v789_v14 }
 0x222   : > { %1410 = vmatmul.msk.f32.gmra.mxu3 %vm407_vm1, %v823_v12  ;;  %v832_v11 = vrot.slane %v823_v12, 7  ;;  %v841_v34 = vrot.slane %v823_v12, 1 }
 0x223   : > { %v1407_v23 = vclamps-f32 %v814_v19, 1.0 }
 0x224   : > { %v833_v20 = vsel %vm378_vm0, %v830_v49, %v832_v11  ;;  %v842_v17 = vsel %vm388_vm2, %v839_v52, %v841_v34 }
 0x225   : > { %1414 = vmatmul.msk.f32.gmra.mxu0 %vm407_vm1, %v833_v20  ;;  %1417 = vmatmul.msk.f32.gmra.mxu1 %vm407_vm1, %v842_v17  ;;  %v820_v6 = vadd.f32 1.0, %v1407_v23 }
 0x227   : > { %v824_v26 = vmul.f32 %v820_v6, %v652_v25 }
 0x229   : > { %v834_v27 = vrot.slane %v824_v26, 7  ;;  %v843_v28 = vrot.slane %v824_v26, 1 }
 0x22a   : > { %1411 = vmatmul.msk.f32.gmra.mxu3 %vm407_vm1, %v824_v26 }
 0x22b   : > { %v835_v29 = vsel %vm378_vm0, %v832_v11, %v834_v27  ;;  %v844_v30 = vsel %vm388_vm2, %v841_v34, %v843_v28  ;;  %v846_v31 = vsel %vm388_vm2, %v843_v28, 0.0 }
 0x22d   : > { %1415 = vmatmul.msk.f32.gmra.mxu0 %vm407_vm1, %v835_v29  ;;  %1418 = vmatmul.msk.f32.gmra.mxu1 %vm407_vm1, %v844_v30 }
 0x235   : > { %1419 = vmatmul.msk.f32.gmra.mxu1 %vm407_vm1, %v846_v31 }
 0x291   : > { %v919_v63 = vpop.f32.mrf.mxu0 }
 0x294   : > { %v881_v33 = vpop.f32.mrf.mxu3 }
 0x295   : > { %v920_v62 = vadd.f32 %v919_v63, %v881_v33  ;;  %v2107_v33 = vld [vmem:[%s2268_s7] ss:$0 sm:$0xff] }
 0x29a   : > { %v962_v36 = vpop.f32.mrf.mxu1  ;;  %v922_v24 = vpop.f32.mrf.mxu0 }
 0x29b   : > { %v974_v32 = vadd.f32 %v962_v36, %v920_v62  ;;  %v2113_v36 = vld [vmem:[%s2269_s8] ss:$0 sm:$0xff] }
 0x29d   : > { %v982_v37 = vadd.f32 %v1504_v35, %v974_v32  ;;  %v884_v38 = vpop.f32.mrf.mxu3 }
 0x29e   : > { %v923_v8 = vadd.f32 %v922_v24, %v884_v38 }
 0x29f   : > { %v986_v39 = vsel %vm407_vm1, %v982_v37, 0.0 }
 0x2a0   : > { %987 = vadd.xlane.f32.xlu2 %v986_v39 }
 0x2a2   : > { %v965_v40 = vpop.f32.mrf.mxu1  ;;  %v925_v45 = vpop.f32.mrf.mxu0 }
 0x2a3   : > { %v975_v41 = vadd.f32 %v965_v40, %v923_v8 }
 0x2a5   : > { %v887_v42 = vpop.f32.mrf.mxu3  ;;  %v983_v43 = vadd.f32 %v1504_v35, %v975_v41 }
 0x2a6   : > { %v926_v47 = vadd.f32 %v925_v45, %v887_v42 }
 0x2a7   : > { %v989_v46 = vsel %vm407_vm1, %v983_v43, 0.0 }
 0x2a8   : > { %990 = vadd.xlane.f32.xlu0 %v989_v46 }
 0x2aa   : > { %v968_v58 = vpop.f32.mrf.mxu1  ;;  %v928_v53 = vpop.f32.mrf.mxu0 }
 0x2ab   : > { %v976_v48 = vadd.f32 %v968_v58, %v926_v47 }
 0x2ad   : > { %v984_v49 = vadd.f32 %v1504_v35, %v976_v48  ;;  %v890_v51 = vpop.f32.mrf.mxu3 }
 0x2ae   : > { %v929_v55 = vadd.f32 %v928_v53, %v890_v51 }
 0x2af   : > { %v992_v52 = vsel %vm407_vm1, %v984_v49, 0.0 }
 0x2b0   : > { %993 = vadd.xlane.f32.xlu1 %v992_v52 }
 0x2b2   : > { %v971_v56 = vpop.f32.mrf.mxu1 }
 0x2b3   : > { %v977_v16 = vadd.f32 %v971_v56, %v929_v55 }
 0x2b5   : > { %v985_v57 = vadd.f32 %v1504_v35, %v977_v16 }
 0x2b7   : > { %v995_v22 = vsel %vm407_vm1, %v985_v57, 0.0 }
 0x2b8   : > { %996 = vadd.xlane.f32.xlu2 %v995_v22 }
 0x313   : > { %v988_v59 = vpop.xlane.xlu2 %987 }
 0x314   : > { %v998_v60 = vmul.f32 %v988_v59, %v1919_v3 }
 0x316   : > { %v1002_v61 = vsub.f32 %v982_v37, %v998_v60 }
 0x318   : > { %v1006_v0 = vmul.f32 %v1002_v61, %v1002_v61 }
 0x31a   : > { %v1010_v2 = vsel %vm407_vm1, %v1006_v0, 0.0 }
 0x31b   : > { %1011 = vadd.xlane.f32.xlu0 %v1010_v2  ;;  %v991_v4 = vpop.xlane.xlu0 %990 }
 0x31c   : > { %v999_v50 = vmul.f32 %v991_v4, %v1919_v3 }
 0x31e   : > { %v2085_v44 = vsub.f32 %v983_v43, %v999_v50 }
 0x320   : > { %v1007_v5 = vmul.f32 %v2085_v44, %v2085_v44 }
 0x322   : > { %v1013_v7 = vsel %vm407_vm1, %v1007_v5, 0.0  ;;  %v1541_v5 = vld [vmem:[%s1837_s17 + $0x8] sm:$0xff] }
 0x323   : > { %1014 = vadd.xlane.f32.xlu1 %v1013_v7  ;;  %v994_v1 = vpop.xlane.xlu1 %993 }
 0x324   : > { %v1000_v21 = vmul.f32 %v994_v1, %v1919_v3 }
 0x326   : > { %v2091_v9 = vsub.f32 %v984_v49, %v1000_v21 }
 0x328   : > { %v1008_v54 = vmul.f32 %v2091_v9, %v2091_v9 }
 0x32a   : > { %v1016_v10 = vsel %vm407_vm1, %v1008_v54, 0.0 }
 0x32b   : > { %v997_v12 = vpop.xlane.xlu2 %996  ;;  %1017 = vadd.xlane.f32.xlu2 %v1016_v10 }
 0x32c   : > { %v1001_v14 = vmul.f32 %v997_v12, %v1919_v3 }
 0x32e   : > { %v2097_v15 = vsub.f32 %v985_v57, %v1001_v14 }
 0x330   : > { %v1009_v18 = vmul.f32 %v2097_v15, %v2097_v15 }
 0x332   : > { %v1019_v11 = vsel %vm407_vm1, %v1009_v18, 0.0 }
 0x333   : > { %1020 = vadd.xlane.f32.xlu0 %v1019_v11 }
 0x38e   : > { %v1012_v34 = vpop.xlane.xlu0 %1011 }
 0x38f   : > { %v1022_v19 = vmul.f32 %v1012_v34, %v1919_v3 }
 0x391   : > { %v1026_v20 = vadd.f32 1e-05, %v1022_v19 }
 0x393   : > { %1525 = vrsqrt.f32 %v1026_v20  ;;  %vm1036_vm2 = vweird.f32 %v1026_v20 }
 0x396   : > { %v1015_v25 = vpop.xlane.xlu1 %1014 }
 0x397   : > { %v1023_v6 = vmul.f32 %v1015_v25, %v1919_v3 }
 0x399   : > { %v1526_v17 = vpop.eup %1525  ;;  %v1027_v27 = vadd.f32 1e-05, %v1023_v6 }
 0x39a   : > { %v1031_v23 = vmul.f32 %v1526_v17, %v1026_v20  ;;  %vm1037_vm0 = vweird.f32 %v1526_v17 }
 0x39b   : > { %1527 = vrsqrt.f32 %v1027_v27  ;;  %vm1038_vm6 = vmor %vm1036_vm2, %vm1037_vm0  ;;  %vm1046_vm8 = vweird.f32 %v1027_v27 }
 0x39c   : > { %v1032_v26 = vmul.f32 %v1526_v17, %v1031_v23 }
 0x39e   : > { %v1033_v28 = vmul.f32 0.5, %v1032_v26  ;;  %v1018_v31 = vpop.xlane.xlu2 %1017 }
 0x39f   : > { %v1024_v63 = vmul.f32 %v1018_v31, %v1919_v3 }
 0x3a0   : > { %v1034_v29 = vsub.f32 1.5, %v1033_v28 }
 0x3a1   : > { %v1528_v35 = vpop.eup %1527  ;;  %v1028_v37 = vadd.f32 1e-05, %v1024_v63 }
 0x3a2   : > { %v1035_v30 = vmul.f32 %v1526_v17, %v1034_v29  ;;  %v1041_v38 = vmul.f32 %v1528_v35, %v1027_v27  ;;  %vm1047_vm7 = vweird.f32 %v1528_v35  ;;  %v1542_v27 = vld [vmem:[%s1837_s17 + $0x10] sm:$0xff] }
 0x3a3   : > { %1529 = vrsqrt.f32 %v1028_v37  ;;  %vm1048_vm9 = vmor %vm1046_vm8, %vm1047_vm7  ;;  %vm1056_vm11 = vweird.f32 %v1028_v37 }
 0x3a4   : > { %v1039_v62 = vsel %vm1038_vm6, %v1526_v17, %v1035_v30  ;;  %v1042_v24 = vmul.f32 %v1528_v35, %v1041_v38 }
 0x3a5   : > { %v1070_v32 = vmul.f32 %v1039_v62, %v1002_v61 }
 0x3a6   : > { %v1043_v40 = vmul.f32 0.5, %v1042_v24  ;;  %v1021_v41 = vpop.xlane.xlu0 %1020 }
 0x3a7   : > { %v1078_v39 = vmul.f32 %v2107_v33, %v1070_v32  ;;  %v1025_v43 = vmul.f32 %v1021_v41, %v1919_v3 }
 0x3a8   : > { %v1044_v45 = vsub.f32 1.5, %v1043_v40 }
 0x3a9   : > { %v1086_v8 = vadd.f32 %v2113_v36, %v1078_v39  ;;  %v1530_v46 = vpop.eup %1529  ;;  %v1029_v58 = vadd.f32 1e-05, %v1025_v43 }
 0x3aa   : > { %v1045_v48 = vmul.f32 %v1528_v35, %v1044_v45  ;;  %v1051_v49 = vmul.f32 %v1530_v46, %v1028_v37  ;;  %vm1057_vm10 = vweird.f32 %v1530_v46 }
 0x3ab   : > { %v2118_v42 = vadd.f32 %v1086_v8, %v1877_v13  ;;  %1531 = vrsqrt.f32 %v1029_v58  ;;  %vm1058_vm12 = vmor %vm1056_vm11, %vm1057_vm10  ;;  %vm1066_vm14 = vweird.f32 %v1029_v58 }
 0x3ac   : > { %v1049_v52 = vsel %vm1048_vm9, %v1528_v35, %v1045_v48  ;;  %v1052_v13 = vmul.f32 %v1530_v46, %v1051_v49 }
 0x3ad   : > { %v2122_v47 = vmul.f32 0.70710677, %v2118_v42  ;;  %v1071_v3 = vmul.f32 %v1049_v52, %v2085_v44 }
 0x3ae   : > { %v1053_v55 = vmul.f32 0.5, %v1052_v13 }
 0x3af   : > { %v1102_v51 = vmul.f32 %v2122_v47, %v2122_v47  ;;  %v1079_v57 = vmul.f32 %v2107_v33, %v1071_v3  ;;  %v1543_v3 = vld [vmem:[%s1837_s17 + $0x18] sm:$0xff]  ;;  %s2205_s17 = scalar_lea.vmem [#allocation7], %s1381_s11  ;;  %s1430_s11 = sshll.u32 %s1753_s13, 5 }
 0x3b0   : > { %v1054_v22 = vsub.f32 1.5, %v1053_v55  ;;  %s1286_s25 = scalar_lea.hbm %s2270_s9, %s1430_s11  ;;  %s1287_s22 = sshll.u32 %s2205_s17, 4  ;;  %s1288_s22 = int_to_ptr.vmem [resolvable:$true] %s1287_s22 }
 0x3b1   : > { %v2126_v53 = vmin.f32 %v1102_v51, 16.0  ;;  %v1532_v59 = vpop.eup %1531  ;;  %v1087_v0 = vadd.f32 %v2113_v36, %v1079_v57  ;;  %s1289_s27 = sshll.u32 %s1286_s25, 4  ;;  %s1275_s13 = scalar_lea.sflag [#allocation4], %s1831_s5  ;;  %s1290_s27 = int_to_ptr.hbm [resolvable:$true] %s1289_s27 }
 0x3b2   : > { %v1055_v2 = vmul.f32 %v1530_v46, %v1054_v22  ;;  %v1061_v4 = vmul.f32 %v1532_v59, %v1029_v58  ;;  %vm1067_vm13 = vweird.f32 %v1532_v59  ;;  %s1618_s18 = sshra.s32 %s1290_s27, 4  ;;  %s1619_s18 = int_to_ptr.hbm [resolvable:$true] %s1618_s18 }
 0x3b3   : > { %v1104_v56 = vmul.f32 2.1237322e-06, %v2126_v53  ;;  %v1115_v16 = vmul.f32 3.8918573e-05, %v2126_v53  ;;  %v2136_v7 = vadd.f32 %v1541_v5, %v1087_v0  ;;  %vm1068_vm15 = vmor %vm1066_vm14, %vm1067_vm13  ;;  %s1620_s15 = scalar_lea.hbm %s1619_s18, 32  ;;  %p1625_p11 = scmp.lt.s32.totalorder %s1619_s18, %s2270_s9 }
 0x3b4   : > { %v1059_v1 = vsel %vm1058_vm12, %v1530_v46, %v1055_v2  ;;  %v1062_v21 = vmul.f32 %v1532_v59, %v1061_v4  ;;  %p1621_p1 = scmp.ne.s32.totalorder %s1619_s18, %s1620_s15  ;;  %p1626_p9 = scmp.lt.s32.totalorder %s1624_s14, %s1620_s15 }
 0x3b5   : > { %v1105_v60 = vadd.f32 0.00028619796, %v1104_v56  ;;  %v1116_v61 = vadd.f32 0.001143296, %v1115_v16  ;;  %v1072_v12 = vmul.f32 %v1059_v1, %v2091_v9  ;;  %v2140_v14 = vmul.f32 0.70710677, %v2136_v7 }
 0x3b6   : > { %v1063_v18 = vmul.f32 0.5, %v1062_v21  ;;  %p1622_p4 = pnand %p1621_p1, %p1801_p3  ;;  %p1627_p2 = por %p1626_p9, %p1625_p11 }
 0x3b7   : > { %v1106_v50 = vmul.f32 %v1105_v60, %v2126_v53  ;;  %v1117_v44 = vmul.f32 %v1116_v61, %v2126_v53  ;;  %v1080_v34 = vmul.f32 %v2107_v33, %v1072_v12  ;;  %v1142_v20 = vmul.f32 %v2140_v14, %v2140_v14 }
 0x3b8   : > { %v1064_v17 = vsub.f32 1.5, %v1063_v18  ;;  %p1623_p8 = pneg %p1622_p4 }
 0x3b9   : > { %v1107_v54 = vadd.f32 0.0036580483, %v1106_v50  ;;  %v1118_v10 = vadd.f32 0.014752088, %v1117_v44  ;;  %v1088_v25 = vadd.f32 %v2113_v36, %v1080_v34  ;;  %v2148_v6 = vmin.f32 %v1142_v20, 16.0 }
 0x3ba   : > { %v1065_v9 = vmul.f32 %v1532_v59, %v1064_v17  ;;  %p1628_p10 = pnand %p1627_p2, %p1623_p8 }
 0x3bb   : > { %v1119_v11 = vmul.f32 %v1118_v10, %v2126_v53  ;;  %v1108_v19 = vmul.f32 %v1107_v54, %v2126_v53  ;;  %v2152_v28 = vadd.f32 %v1542_v27, %v1088_v25  ;;  %v1144_v30 = vmul.f32 2.1237322e-06, %v2148_v6 }
 0x3bc   : > { %v1155_v31 = vmul.f32 3.8918573e-05, %v2148_v6  ;;  %v1069_v63 = vsel %vm1068_vm15, %v1532_v59, %v1065_v9 }
 0x3bd   : > { %v1120_v23 = vadd.f32 0.112945676, %v1119_v11  ;;  %v1109_v29 = vadd.f32 0.05243302, %v1108_v19  ;;  %v1073_v35 = vmul.f32 %v1069_v63, %v2097_v15  ;;  %v1145_v32 = vadd.f32 0.00028619796, %v1144_v30 }
 0x3be   : > { %v1156_v37 = vadd.f32 0.001143296, %v1155_v31  ;;  %v2158_v38 = vmul.f32 0.70710677, %v2152_v28 }
 0x3bf   : > { %v1121_v26 = vmul.f32 %v1120_v23, %v2126_v53  ;;  %v1081_v24 = vmul.f32 %v2107_v33, %v1073_v35  ;;  %v1110_v8 = vmul.f32 %v1109_v29, %v2126_v53  ;;  %v1146_v40 = vmul.f32 %v1145_v32, %v2148_v6 }
 0x3c0   : > { %v1157_v41 = vmul.f32 %v1156_v37, %v2148_v6  ;;  %v1182_v43 = vmul.f32 %v2158_v38, %v2158_v38 }
 0x3c1   : > { %v1122_v62 = vadd.f32 0.4994258, %v1121_v26  ;;  %v1089_v45 = vadd.f32 %v2113_v36, %v1081_v24  ;;  %v1147_v46 = vadd.f32 0.0036580483, %v1146_v40  ;;  %v1111_v49 = vadd.f32 0.18741608, %v1110_v8 }
 0x3c2   : > { %v1158_v58 = vadd.f32 0.014752088, %v1157_v41  ;;  %v2168_v48 = vmin.f32 %v1182_v43, 16.0 }
 0x3c3   : > { %v1123_v39 = vmul.f32 %v1122_v62, %v2126_v53  ;;  %v1148_v52 = vmul.f32 %v1147_v46, %v2148_v6  ;;  %v2175_v55 = vadd.f32 %v1543_v3, %v1089_v45  ;;  %v1112_v57 = vmul.f32 %v1111_v49, %v2126_v53 }
 0x3c4   : > { %v1159_v33 = vmul.f32 %v1158_v58, %v2148_v6  ;;  %v1184_v51 = vmul.f32 2.1237322e-06, %v2168_v48  ;;  %v1195_v13 = vmul.f32 3.8918573e-05, %v2168_v48 }
 0x3c5   : > { %v1124_v15 = vadd.f32 1.0, %v1123_v39  ;;  %v2180_v59 = vmul.f32 0.70710677, %v2175_v55  ;;  %v1149_v61 = vadd.f32 0.05243302, %v1148_v52 }
 0x3c6   : > { %v1160_v56 = vadd.f32 0.112945676, %v1159_v33  ;;  %v1185_v16 = vadd.f32 0.00028619796, %v1184_v51  ;;  %v1196_v36 = vadd.f32 0.001143296, %v1195_v13 }
 0x3c7   : > { %1533 = vrcp.f32 %v1124_v15  ;;  %v1222_v5 = vmul.f32 %v2180_v59, %v2180_v59  ;;  %v1113_v1 = vadd.f32 1.1283791, %v1112_v57  ;;  %v1136_v10 = vand.u32 2147483648, %v1124_v15 }
 0x3c8   : > { %v1161_v22 = vmul.f32 %v1160_v56, %v2148_v6  ;;  %v1186_v0 = vmul.f32 %v1185_v16, %v2168_v48  ;;  %v1197_v2 = vmul.f32 %v1196_v36, %v2168_v48  ;;  %v1150_v12 = vmul.f32 %v1149_v61, %v2148_v6 }
 0x3c9   : > { %v2189_v11 = vmin.f32 %v1222_v5, 16.0  ;;  %v1134_v19 = vand.u32 2147483647, %v1124_v15  ;;  %vm1130_vm4 = vweird.f32 %v1124_v15  ;;  %v1137_v26 = vor.u32 1.1754944e-38, %v1136_v10 }
 0x3ca   : > { %v1162_v50 = vadd.f32 0.4994258, %v1161_v22  ;;  %v1198_v44 = vadd.f32 0.014752088, %v1197_v2  ;;  %v1187_v54 = vadd.f32 0.0036580483, %v1186_v0  ;;  %v1114_v30 = vmul.f32 %v1113_v1, %v2122_v47 }
 0x3cb   : > { %v1224_v23 = vmul.f32 2.1237322e-06, %v2189_v11  ;;  %v1151_v27 = vadd.f32 0.18741608, %v1150_v12  ;;  %vm1135_vm0 = vcmp.eq.f32.partialorder %v1134_v19, 8.507059e+37  ;;  %v1094_v47 = vmul.f32 0.5, %v2118_v42 }
 0x3cc   : > { %v1163_v53 = vmul.f32 %v1162_v50, %v2148_v6  ;;  %v1199_v18 = vmul.f32 %v1198_v44, %v2168_v48  ;;  %v1188_v9 = vmul.f32 %v1187_v54, %v2168_v48  ;;  %v1235_v63 = vmul.f32 3.8918573e-05, %v2189_v11 }
 0x3cd   : > { %v1534_v60 = vpop.eup %1533  ;;  %v1225_v35 = vadd.f32 0.00028619796, %v1224_v23  ;;  %v1152_v8 = vmul.f32 %v1151_v27, %v2148_v6 }
 0x3ce   : > { %v1126_v4 = vmul.f32 %v1534_v60, %v1124_v15  ;;  %vm1131_vm3 = vweird.f32 %v1534_v60  ;;  %v1164_v20 = vadd.f32 1.0, %v1163_v53  ;;  %v1200_v17 = vadd.f32 0.112945676, %v1199_v18 }
 0x3cf   : > { %vm1132_vm5 = vmor %vm1130_vm4, %vm1131_vm3  ;;  %v1189_v37 = vadd.f32 0.05243302, %v1188_v9  ;;  %v1236_v24 = vadd.f32 0.001143296, %v1235_v63  ;;  %v1226_v46 = vmul.f32 %v1225_v35, %v2189_v11  ;;  %v1153_v52 = vadd.f32 1.1283791, %v1152_v8 }
 0x3d0   : > { %v1127_v21 = vsub.f32 1.0, %v1126_v4  ;;  %1535 = vrcp.f32 %v1164_v20  ;;  %v1201_v29 = vmul.f32 %v1200_v17, %v2168_v48  ;;  %v1174_v3 = vand.u32 2147483647, %v1164_v20 }
 0x3d1   : > { %v1237_v15 = vmul.f32 %v1236_v24, %v2189_v11  ;;  %v1190_v49 = vmul.f32 %v1189_v37, %v2168_v48  ;;  %v1176_v56 = vand.u32 2147483648, %v1164_v20  ;;  %v1227_v36 = vadd.f32 0.0036580483, %v1226_v46 }
 0x3d2   : > { %v1128_v34 = vmul.f32 %v1534_v60, %v1127_v21  ;;  %v1202_v39 = vadd.f32 0.4994258, %v1201_v29  ;;  %vm1170_vm6 = vweird.f32 %v1164_v20  ;;  %v1154_v61 = vmul.f32 %v1153_v52, %v2140_v14 }
 0x3d3   : > { %v1238_v51 = vadd.f32 0.014752088, %v1237_v15  ;;  %v1191_v57 = vadd.f32 0.18741608, %v1190_v49  ;;  %v1177_v0 = vor.u32 1.1754944e-38, %v1176_v56  ;;  %vm1175_vm8 = vcmp.eq.f32.partialorder %v1174_v3, 8.507059e+37 }
 0x3d4   : > { %v1129_v25 = vadd.f32 %v1534_v60, %v1128_v34  ;;  %v1203_v43 = vmul.f32 %v1202_v39, %v2168_v48  ;;  %v1228_v4 = vmul.f32 %v1227_v36, %v2189_v11  ;;  %v1095_v14 = vmul.f32 0.5, %v2136_v7 }
 0x3d5   : > { %v1239_v42 = vmul.f32 %v1238_v51, %v2189_v11  ;;  %v1192_v1 = vmul.f32 %v1191_v57, %v2168_v48  ;;  %v1096_v37 = vmul.f32 0.5, %v2152_v28  ;;  %v1097_v51 = vmul.f32 0.5, %v2175_v55 }
 0x3d6   : > { %v1133_v31 = vsel %vm1132_vm5, %v1534_v60, %v1129_v25  ;;  %v1536_v40 = vpop.eup %1535  ;;  %v1204_v33 = vadd.f32 1.0, %v1203_v43  ;;  %v1229_v18 = vadd.f32 0.05243302, %v1228_v4 }
 0x3d7   : > { %v1138_v62 = vsel %vm1135_vm0, %v1137_v26, %v1133_v31  ;;  %v1166_v45 = vmul.f32 %v1536_v40, %v1164_v20  ;;  %vm1171_vm2 = vweird.f32 %v1536_v40  ;;  %v1240_v60 = vadd.f32 0.112945676, %v1239_v42 }
 0x3d8   : > { %v1139_v32 = vmul.f32 %v1138_v62, %v1114_v30  ;;  %1537 = vrcp.f32 %v1204_v33  ;;  %vm1172_vm7 = vmor %vm1170_vm6, %vm1171_vm2  ;;  %v1193_v34 = vadd.f32 1.1283791, %v1192_v1  ;;  %v1216_v19 = vand.u32 2147483648, %v1204_v33 }
 0x3d9   : > { %v1167_v13 = vsub.f32 1.0, %v1166_v45  ;;  %v1241_v50 = vmul.f32 %v1240_v60, %v2189_v11  ;;  %v1214_v25 = vand.u32 2147483647, %v1204_v33  ;;  %vm1210_vm10 = vweird.f32 %v1204_v33 }
 0x3da   : > { %v1420_v41 = vclamps-f32 %v1139_v32, 1.0  ;;  %v1230_v27 = vmul.f32 %v1229_v18, %v2189_v11  ;;  %v1217_v29 = vor.u32 1.1754944e-38, %v1216_v19  ;;  %v1194_v7 = vmul.f32 %v1193_v34, %v2158_v38 }
 0x3db   : > { %v1168_v16 = vmul.f32 %v1536_v40, %v1167_v13  ;;  %v1242_v54 = vadd.f32 0.4994258, %v1241_v50  ;;  %vm1215_vm12 = vcmp.eq.f32.partialorder %v1214_v25, 8.507059e+37 }
 0x3dc   : > { %v1262_v58 = vadd.f32 1.0, %v1420_v41  ;;  %v1231_v62 = vadd.f32 0.18741608, %v1230_v27 }
 0x3dd   : > { %v1169_v22 = vadd.f32 %v1536_v40, %v1168_v16  ;;  %v1243_v20 = vmul.f32 %v1242_v54, %v2189_v11 }
 0x3de   : > { %v1266_v6 = vmul.f32 %v1262_v58, %v1094_v47  ;;  %v1538_v44 = vpop.eup %1537  ;;  %v1232_v24 = vmul.f32 %v1231_v62, %v2189_v11 }
 0x3df   : > { %v1173_v2 = vsel %vm1172_vm7, %v1536_v40, %v1169_v22  ;;  %v1206_v53 = vmul.f32 %v1538_v44, %v1204_v33  ;;  %vm1211_vm9 = vweird.f32 %v1538_v44  ;;  %v1244_v9 = vadd.f32 1.0, %v1243_v20 }
 0x3e0   : > { %1270 = vst.msk [vmem:[%s2205_s17] sm:$0xff] %vm407_vm1, %v1266_v6  ;;  %v1178_v5 = vsel %vm1175_vm8, %v1177_v0, %v1173_v2  ;;  %vm1212_vm11 = vmor %vm1210_vm10, %vm1211_vm9  ;;  %v1233_v43 = vadd.f32 1.1283791, %v1232_v24 }
 0x3e1   : > { %v1179_v21 = vmul.f32 %v1178_v5, %v1154_v61  ;;  %v1207_v12 = vsub.f32 1.0, %v1206_v53  ;;  %1539 = vrcp.f32 %v1244_v9  ;;  %v1256_v38 = vand.u32 2147483648, %v1244_v9 }
 0x3e2   : > { %v1254_v47 = vand.u32 2147483647, %v1244_v9  ;;  %vm1250_vm14 = vweird.f32 %v1244_v9  ;;  %v1234_v11 = vmul.f32 %v1233_v43, %v2180_v59 }
 0x3e3   : > { %v1421_v10 = vclamps-f32 %v1179_v21, 1.0  ;;  %v1208_v23 = vmul.f32 %v1538_v44, %v1207_v12  ;;  %v1257_v28 = vor.u32 1.1754944e-38, %v1256_v38 }
 0x3e4   : > { %vm1255_vm3 = vcmp.eq.f32.partialorder %v1254_v47, 8.507059e+37 }
 0x3e5   : > { %v1263_v17 = vadd.f32 1.0, %v1421_v10  ;;  %v1209_v48 = vadd.f32 %v1538_v44, %v1208_v23 }
 0x3e7   : > { %v1267_v26 = vmul.f32 %v1263_v17, %v1095_v14  ;;  %v1213_v30 = vsel %vm1212_vm11, %v1538_v44, %v1209_v48  ;;  %v1540_v32 = vpop.eup %1539 }
 0x3e8   : > { %v1218_v31 = vsel %vm1215_vm12, %v1217_v29, %v1213_v30  ;;  %v1246_v8 = vmul.f32 %v1540_v32, %v1244_v9  ;;  %vm1251_vm13 = vweird.f32 %v1540_v32 }
 0x3e9   : > { %1271 = vst.msk [vmem:[%s2205_s17 + $0x8] sm:$0xff] %vm407_vm1, %v1267_v26  ;;  %v1219_v63 = vmul.f32 %v1218_v31, %v1194_v7  ;;  %vm1252_vm15 = vmor %vm1250_vm14, %vm1251_vm13 }
 0x3ea   : > { %v1247_v41 = vsub.f32 1.0, %v1246_v8 }
 0x3eb   : > { %v1422_v35 = vclamps-f32 %v1219_v63, 1.0 }
 0x3ec   : > { %v1248_v15 = vmul.f32 %v1540_v32, %v1247_v41 }
 0x3ed   : > { %v1264_v39 = vadd.f32 1.0, %v1422_v35 }
 0x3ee   : > { %v1249_v45 = vadd.f32 %v1540_v32, %v1248_v15 }
 0x3ef   : > { %v1268_v40 = vmul.f32 %v1264_v39, %v1096_v37 }
 0x3f0   : > { %v1253_v46 = vsel %vm1252_vm15, %v1540_v32, %v1249_v45 }
 0x3f1   : > { %1272 = vst.msk [vmem:[%s2205_s17 + $0x10] sm:$0xff] %vm407_vm1, %v1268_v40  ;;  %v1258_v58 = vsel %vm1255_vm3, %v1257_v28, %v1253_v46 }
 0x3f2   : > { %v1259_v49 = vmul.f32 %v1258_v58, %v1234_v11 }
 0x3f4   : > { %v1423_v33 = vclamps-f32 %v1259_v49, 1.0 }
 0x3f6   : > { %v1265_v52 = vadd.f32 1.0, %v1423_v33 }
 0x3f8   : > { %v1269_v13 = vmul.f32 %v1265_v52, %v1097_v51 }
 0x3fa   : > { %1273 = vst.msk [vmem:[%s2205_s17 + $0x18] sm:$0xff] %vm407_vm1, %v1269_v13 }
 0x3fb   : > { %1631 = shalt.err (!%p1628_p10)
}
 0x3fc   : > { %s1680_s5 = smov 128   ;;  %s1681_s17 = smov 8  }
 0x3fd   : > { %1445 = dma.vmem_to_hbm [thread:$0]  (%p1801_p3), %s1288_s22, 512, %s1290_s27, %s1275_s13, %s1680_s5, %s1680_s5, %s1681_s17  }
 0x3fe PF: > { %s1304_s11 = sand.u32 1, %s1662_s30   ;;  %p2285_p12 = scmp.ge.s32.totalorder %s1674_s12, 2 }
 0x3ff   : > { %s1305_s20 = scalar_lea.sflag [#allocation4], %s1304_s11 }
 0x400   : > { %p1456_p13 = pnand %p2285_p12, %p1767_p6 }
 0x402   : > { %p1457_p0 = pneg %p1456_p13 }
 0x404   : > { %1657 = dma.done.wait (%p1457_p0), %s1305_s20, 512  }
 0x405   : > { %1659 = vsyncadd (%p1457_p0), %s1305_s20, 4294966784  ;;  %s2286_s24 = sld [smem:[#allocation11_spill]]  ;;  %p23_p5 = scmp.ge.s32.totalorder %s1785_s23, 4  }
 0x406   : > { %s2287_s11 = sld [smem:[#allocation12_spill]]  ;;  %s2288_s30 = smov %s1666_s10 }
 0x407   : > { %s2290_s12 = smov %s1785_s23  ;;  %25 = sbr.rel (!%p23_p5) target bundleno = 8 (0x8), region = 109 }
 0x40b   : > { %s2289_s10 = smov %s2286_s24 }
 0x40c   :  { %1311 = vsyncpa [#allocation3], 1 }
 0x40d   :  { %1313 = vsyncpa [#allocation3 + $0x1], 1 }
 0x40e   :  { %1314 = vsyncpa [#allocation6], 1 }
 0x40f   :  { %1315 = vsyncpa [#allocation4], 1 }
 0x410   :  { %1317 = vsyncpa [#allocation4 + $0x1], 1 }

</bundles_post_ra>
